<compile_context>
chip_gen: v6e
topology: v6e:2x2x1
jax: 0.10.0
libtpu: 0.0.40
codegen_flags: <defaults>
</compile_context>

<pallas_src>
import functools

import numpy as np
import jax
import jax.numpy as jnp
from jax.experimental import pallas as pl
from jax.experimental.pallas import tpu as pltpu

EPS = 1e-5


def _round_up(n, m=128):
    return ((n + m - 1) // m) * m


# ---------------------------------------------------------------------------
# Fused kernel: RevIN norm -> TSMixer layers -> temporal proj -> RevIN denorm
# ---------------------------------------------------------------------------
def tmixer_fused_kernel(x_ref, cred_ref, cexp_ref, mask_ref,
                        rw_ref, rb_ref, irw_ref,
                        g1_ref, b1_ref, wt_ref, bt_ref,
                        g2_ref, b2_ref, wf1_ref, bf1_ref, wf2_ref, bf2_ref,
                        wp_ref, bp_ref, o_ref,
                        *, B, L, O, n_clusters, n_layers):
    x = x_ref[...]                        # (B*L, P) lane-dense, P = 128-padded channels
    cred = cred_ref[...]                  # (P, K)   per-cluster 1/Cc reduce matrix
    cexp = cexp_ref[...]                  # (K, P)   per-cluster broadcast matrix
    rw = rw_ref[...]                      # (1, P)   RevIN affine weight (pad lanes = 1)
    rb = rb_ref[...]                      # (1, P)   RevIN affine bias   (pad lanes = 0)
    irw = irw_ref[...]                    # (1, P)   precomputed 1/(rw + EPS*EPS)

    # ---- RevIN normalize per batch row-block; stats stay resident for the denorm ----
    xn, mus, stds = [], [], []
    for b in range(B):                    # statically unrolled (small B)
        xb = x[b * L:(b + 1) * L, :]
        mu = jnp.mean(xb, axis=0, keepdims=True)                       # (1, P)
        var = jnp.mean((xb - mu) * (xb - mu), axis=0, keepdims=True)
        inv_std = jax.lax.rsqrt(var + EPS)
        xn.append((xb - mu) * inv_std * rw + rb)
        mus.append(mu)
        stds.append((var + EPS) * inv_std)        # == sqrt(var+EPS), no second sqrt
    x = jnp.concatenate(xn, axis=0)                                    # (B*L, P)

    def grouped_ln(v, gamma, beta):
        # LayerNorm over each cluster's channel lanes, per (batch,time) row:
        # two thin matmuls (reduce to K groups, expand back) -> no reshapes/transposes.
        mu = jnp.dot(jnp.dot(v, cred, preferred_element_type=jnp.float32), cexp,
                     preferred_element_type=jnp.float32)
        vc = v - mu
        var = jnp.dot(jnp.dot(vc * vc, cred, preferred_element_type=jnp.float32), cexp,
                      preferred_element_type=jnp.float32)
        return vc * jax.lax.rsqrt(var + EPS) * gamma + beta

    # NOTE: bf16 operand cast for the jnp.dot calls (keeping f32 accumulation) is a
    # further MXU-throughput option on v6e/v7x; kept f32 for reference parity.
    for n in range(n_layers):             # statically unrolled (n_layers = 2)
        # --- temporal mixing: LN -> per-cluster Linear over time -> ReLU -> residual
        y = grouped_ln(x, g1_ref[n], b1_ref[n])
        rows = []
        for b in range(B):                # TODO(synk): lax.fori_loop for large B
            yb = y[b * L:(b + 1) * L, :]  # sublane slice (multiple of 8)
            acc = mask_ref[0] * jnp.dot(wt_ref[n * n_clusters + 0], yb,
                                        preferred_element_type=jnp.float32)
            for k in range(1, n_clusters):
                acc = acc + mask_ref[k] * jnp.dot(wt_ref[n * n_clusters + k], yb,
                                                  preferred_element_type=jnp.float32)
            rows.append(jnp.maximum(acc + bt_ref[n], 0.0))             # bias is (L, P)
        x = x + jnp.concatenate(rows, axis=0)

        # --- feature mixing: LN -> cluster-block-diag MLP, batch rides M -> residual
        y = grouped_ln(x, g2_ref[n], b2_ref[n])
        h = jnp.maximum(
            jnp.dot(y, wf1_ref[n], preferred_element_type=jnp.float32) + bf1_ref[n],
            0.0)                                                       # (B*L, PH)
        x = x + jnp.dot(h, wf2_ref[n], preferred_element_type=jnp.float32) + bf2_ref[n]

    # ---- temporal projection L -> O fused with RevIN denormalize, per batch block ----
    for b in range(B):
        xb = x[b * L:(b + 1) * L, :]
        acc = mask_ref[0] * jnp.dot(wp_ref[0], xb, preferred_element_type=jnp.float32)
        for k in range(1, n_clusters):
            acc = acc + mask_ref[k] * jnp.dot(wp_ref[k], xb,
                                              preferred_element_type=jnp.float32)
        acc = acc + bp_ref[...]                                        # (O, P) bias
        # RevIN denorm with the resident per-batch stats; lane-dense (O, 128) store.
        o_ref[b * O:(b + 1) * O, :] = (acc - rb) * irw * stds[b] + mus[b]


# ---------------------------------------------------------------------------
# pallas_call wrapper: single fused grid step (K grid collapsed)
# ---------------------------------------------------------------------------
def tmixer_h_fused_call(x2d, fp, *, B, L, O, K, n_layers):
    P = x2d.shape[1]
    kernel = functools.partial(tmixer_fused_kernel, B=B, L=L, O=O,
                               n_clusters=K, n_layers=n_layers)
    operands = (x2d, fp["cred"], fp["cexp"], fp["mask"], fp["rw"], fp["rb"], fp["irw"],
                fp["g1"], fp["b1"], fp["wt"], fp["btf"], fp["g2"], fp["b2"],
                fp["wf1"], fp["bf1"], fp["wf2"], fp["bf2"], fp["wp"], fp["bpf"])
    in_specs = [pl.BlockSpec(a.shape, lambda i, nd=a.ndim: (0,) * nd) for a in operands]
    return pl.pallas_call(
        kernel,
        out_shape=jax.ShapeDtypeStruct((B * O, P), jnp.float32),
        grid=(1,),                        # single step: whole problem in one VMEM block
        in_specs=in_specs,
        out_specs=pl.BlockSpec((B * O, P), lambda i: (0, 0)),
        compiler_params=pltpu.CompilerParams(
            dimension_semantics=("arbitrary",),
            vmem_limit_bytes=32 * 1024 * 1024),
    )(*operands)


# ---------------------------------------------------------------------------
# TMixerH forward (layout plumbing only: channel sort + lane pad; no transposes)
# ---------------------------------------------------------------------------
def tmixer_h_forward(x, fp, perm, inv_perm, pred_len, n_clusters, n_layers):
    B, L, C = x.shape
    xs = x[:, :, perm]                                  # sort channels into cluster slabs
    P = fp["rw"].shape[1]
    x2d = jnp.pad(xs.reshape(B * L, C), ((0, 0), (0, P - C)))          # lane-pad to 128
    ok = tmixer_h_fused_call(x2d, fp, B=B, L=L, O=pred_len, K=n_clusters,
                             n_layers=n_layers)                        # (B*O, P)
    out = ok.reshape(B, pred_len, P)[:, :, :C]
    return out[:, :, inv_perm]                          # un-sort channels


# ---------------------------------------------------------------------------
# Parameter construction / one-time re-layout to the lane-packed kernel format
# ---------------------------------------------------------------------------
def init_cluster_params(key, n_layers, in_len, out_len, n_ch, d_ff):
    ks = jax.random.split(key, 4)
    scale = 0.02
    return dict(
        g1=jnp.ones((n_layers, n_ch), jnp.float32),
        b1=jnp.zeros((n_layers, n_ch), jnp.float32),
        wt=scale * jax.random.normal(ks[0], (n_layers, in_len, in_len), jnp.float32),
        bt=jnp.zeros((n_layers, in_len), jnp.float32),
        g2=jnp.ones((n_layers, n_ch), jnp.float32),
        b2=jnp.zeros((n_layers, n_ch), jnp.float32),
        wf1=scale * jax.random.normal(ks[1], (n_layers, n_ch, d_ff), jnp.float32),
        bf1=jnp.zeros((n_layers, d_ff), jnp.float32),
        wf2=scale * jax.random.normal(ks[2], (n_layers, d_ff, n_ch), jnp.float32),
        bf2=jnp.zeros((n_layers, n_ch), jnp.float32),
        wp=scale * jax.random.normal(ks[3], (out_len, in_len), jnp.float32),
        bp=jnp.zeros((out_len,), jnp.float32),
    )


def prepare_fused_params(cluster_params, rev_w, rev_b, cluster_channels, d_ff):
    """One-time re-layout: cluster-block-diag feature weights (no B^2 inflation),
    lane-dense (128-padded) per-channel params, sublane-major time biases."""
    K = len(cluster_params)
    NL, L = cluster_params[0]["wt"].shape[:2]
    O = cluster_params[0]["wp"].shape[0]
    sizes = [int(len(ch)) for ch in cluster_channels]
    offs = np.concatenate([[0], np.cumsum(sizes)]).astype(int)
    C = int(offs[-1])
    P = _round_up(C, 128)
    PH = _round_up(K * d_ff, 128)
    perm = np.concatenate(cluster_channels)

    rw = np.ones((1, P), np.float32)      # pad lanes keep weight=1 / bias=0 -> finite
    rb = np.zeros((1, P), np.float32)
    rw[0, :C] = np.asarray(rev_w)[perm]
    rb[0, :C] = np.asarray(rev_b)[perm]
    irw = 1.0 / (rw + EPS * EPS)

    g1 = np.zeros((NL, 1, P), np.float32); b1 = np.zeros((NL, 1, P), np.float32)
    g2 = np.zeros((NL, 1, P), np.float32); b2 = np.zeros((NL, 1, P), np.float32)
    btf = np.zeros((NL, L, P), np.float32)
    wf1 = np.zeros((NL, P, PH), np.float32); bf1 = np.zeros((NL, 1, PH), np.float32)
    wf2 = np.zeros((NL, PH, P), np.float32); bf2 = np.zeros((NL, 1, P), np.float32)
    wt = np.zeros((NL * K, L, L), np.float32)
    wp = np.zeros((K, O, L), np.float32)
    bpf = np.zeros((O, P), np.float32)
    mask = np.zeros((K, 1, P), np.float32)
    cred = np.zeros((P, K), np.float32)
    cexp = np.zeros((K, P), np.float32)

    for k, p in enumerate(cluster_params):
        c0, c1 = int(offs[k]), int(offs[k + 1])
        h0, h1 = k * d_ff, (k + 1) * d_ff
        cc = c1 - c0
        g1[:, 0, c0:c1] = np.asarray(p["g1"]); b1[:, 0, c0:c1] = np.asarray(p["b1"])
        g2[:, 0, c0:c1] = np.asarray(p["g2"]); b2[:, 0, c0:c1] = np.asarray(p["b2"])
        btf[:, :, c0:c1] = np.asarray(p["bt"])[:, :, None]
        wf1[:, c0:c1, h0:h1] = np.asarray(p["wf1"])
        bf1[:, 0, h0:h1] = np.asarray(p["bf1"])
        wf2[:, h0:h1, c0:c1] = np.asarray(p["wf2"])
        bf2[:, 0, c0:c1] = np.asarray(p["bf2"])
        for n in range(NL):
            wt[n * K + k] = np.asarray(p["wt"])[n]
        wp[k] = np.asarray(p["wp"])
        bpf[:, c0:c1] = np.asarray(p["bp"])[:, None]
        mask[k, 0, c0:c1] = 1.0
        cred[c0:c1, k] = 1.0 / cc
        cexp[k, c0:c1] = 1.0

    arrs = dict(rw=rw, rb=rb, irw=irw, g1=g1, b1=b1, g2=g2, b2=b2, btf=btf,
                wf1=wf1, bf1=bf1, wf2=wf2, bf2=bf2, wt=wt, wp=wp, bpf=bpf,
                mask=mask, cred=cred, cexp=cexp)
    return {k: jnp.asarray(v) for k, v in arrs.items()}, perm


# ---------------------------------------------------------------------------
# Example run
# ---------------------------------------------------------------------------
if __name__ == "__main__":
    # args: seq_len=16, pred_len=8, enc_in=8, num_clusters=2, n_layers=2, d_ff=32
    B, SEQ_LEN, PRED_LEN, ENC_IN = 2, 16, 8, 8
    NUM_CLUSTERS, N_LAYERS, D_FF = 2, 2, 32

    key = jax.random.PRNGKey(0)
    key, kx = jax.random.split(key)
    x = jax.random.normal(kx, (B, SEQ_LEN, ENC_IN), dtype=jnp.float32)

    # RevIN affine params (nn.Parameter ones/zeros init)
    rev_w = jnp.ones((ENC_IN,), jnp.float32)
    rev_b = jnp.zeros((ENC_IN,), jnp.float32)

    # Fixed deterministic hard cluster assignment (channels 0-3 -> 0, 4-7 -> 1).
    # TODO(synk): HardClusterAssigner's data-driven clustering init is done offline.
    assignments = np.array([0, 0, 0, 0, 1, 1, 1, 1], dtype=np.int32)
    cluster_channels = [np.where(assignments == c)[0] for c in range(NUM_CLUSTERS)]
    cluster_channels = [ch for ch in cluster_channels if ch.size > 0]
    K = len(cluster_channels)
    inv_perm = np.argsort(np.concatenate(cluster_channels))

    cluster_params = []
    for ch in cluster_channels:
        key, kc = jax.random.split(key)
        cluster_params.append(
            init_cluster_params(kc, N_LAYERS, SEQ_LEN, PRED_LEN, int(ch.size), D_FF))

    fp, perm = prepare_fused_params(cluster_params, rev_w, rev_b, cluster_channels, D_FF)

    out = tmixer_h_forward(x, fp, perm, inv_perm, PRED_LEN, K, N_LAYERS)
    out = jax.block_until_ready(out)
    assert out.shape == (B, PRED_LEN, ENC_IN)
    assert bool(jnp.all(jnp.isfinite(out)))
    print("KERNEL_OK")
</pallas_src>

<mosaic_0001>
module attributes {stable_mosaic.version = 11 : i64} {
  func.func @tmixer_fused_kernel(%arg0: i32, %arg1: memref<32x128xf32, #tpu.memory_space<vmem>>, %arg2: memref<128x2xf32, #tpu.memory_space<vmem>>, %arg3: memref<2x128xf32, #tpu.memory_space<vmem>>, %arg4: memref<2x1x128xf32, #tpu.memory_space<vmem>>, %arg5: memref<1x128xf32, #tpu.memory_space<vmem>>, %arg6: memref<1x128xf32, #tpu.memory_space<vmem>>, %arg7: memref<1x128xf32, #tpu.memory_space<vmem>>, %arg8: memref<2x1x128xf32, #tpu.memory_space<vmem>>, %arg9: memref<2x1x128xf32, #tpu.memory_space<vmem>>, %arg10: memref<4x16x16xf32, #tpu.memory_space<vmem>>, %arg11: memref<2x16x128xf32, #tpu.memory_space<vmem>>, %arg12: memref<2x1x128xf32, #tpu.memory_space<vmem>>, %arg13: memref<2x1x128xf32, #tpu.memory_space<vmem>>, %arg14: memref<2x128x128xf32, #tpu.memory_space<vmem>>, %arg15: memref<2x1x128xf32, #tpu.memory_space<vmem>>, %arg16: memref<2x128x128xf32, #tpu.memory_space<vmem>>, %arg17: memref<2x1x128xf32, #tpu.memory_space<vmem>>, %arg18: memref<2x8x16xf32, #tpu.memory_space<vmem>>, %arg19: memref<8x128xf32, #tpu.memory_space<vmem>>, %arg20: memref<16x128xf32, #tpu.memory_space<vmem>>) attributes {dimension_semantics = [#tpu.dimension_semantics<arbitrary>], iteration_bounds = array<i64: 1>, scalar_prefetch = 0 : i64, scratch_operands = 0 : i64, tpu.core_type = #tpu.core_type<tc>, window_params = [{pipeline_mode = #tpu.pipeline_mode<synchronous>, transform_indices = @transform_0, window_bounds = array<i64: 32, 128>}, {pipeline_mode = #tpu.pipeline_mode<synchronous>, transform_indices = @transform_1, window_bounds = array<i64: 128, 2>}, {pipeline_mode = #tpu.pipeline_mode<synchronous>, transform_indices = @transform_2, window_bounds = array<i64: 2, 128>}, {pipeline_mode = #tpu.pipeline_mode<synchronous>, transform_indices = @transform_3, window_bounds = array<i64: 2, 1, 128>}, {pipeline_mode = #tpu.pipeline_mode<synchronous>, transform_indices = @transform_4, window_bounds = array<i64: 1, 128>}, {pipeline_mode = #tpu.pipeline_mode<synchronous>, transform_indices = @transform_5, window_bounds = array<i64: 1, 128>}, {pipeline_mode = #tpu.pipeline_mode<synchronous>, transform_indices = @transform_6, window_bounds = array<i64: 1, 128>}, {pipeline_mode = #tpu.pipeline_mode<synchronous>, transform_indices = @transform_7, window_bounds = array<i64: 2, 1, 128>}, {pipeline_mode = #tpu.pipeline_mode<synchronous>, transform_indices = @transform_8, window_bounds = array<i64: 2, 1, 128>}, {pipeline_mode = #tpu.pipeline_mode<synchronous>, transform_indices = @transform_9, window_bounds = array<i64: 4, 16, 16>}, {pipeline_mode = #tpu.pipeline_mode<synchronous>, transform_indices = @transform_10, window_bounds = array<i64: 2, 16, 128>}, {pipeline_mode = #tpu.pipeline_mode<synchronous>, transform_indices = @transform_11, window_bounds = array<i64: 2, 1, 128>}, {pipeline_mode = #tpu.pipeline_mode<synchronous>, transform_indices = @transform_12, window_bounds = array<i64: 2, 1, 128>}, {pipeline_mode = #tpu.pipeline_mode<synchronous>, transform_indices = @transform_13, window_bounds = array<i64: 2, 128, 128>}, {pipeline_mode = #tpu.pipeline_mode<synchronous>, transform_indices = @transform_14, window_bounds = array<i64: 2, 1, 128>}, {pipeline_mode = #tpu.pipeline_mode<synchronous>, transform_indices = @transform_15, window_bounds = array<i64: 2, 128, 128>}, {pipeline_mode = #tpu.pipeline_mode<synchronous>, transform_indices = @transform_16, window_bounds = array<i64: 2, 1, 128>}, {pipeline_mode = #tpu.pipeline_mode<synchronous>, transform_indices = @transform_17, window_bounds = array<i64: 2, 8, 16>}, {pipeline_mode = #tpu.pipeline_mode<synchronous>, transform_indices = @transform_18, window_bounds = array<i64: 8, 128>}, {pipeline_mode = #tpu.pipeline_mode<synchronous>, transform_indices = @transform_19, window_bounds = array<i64: 16, 128>}]} {
    %c0 = arith.constant 0 : index
    %c0_0 = arith.constant 0 : index
    %0 = vector.load %arg1[%c0, %c0_0] : memref<32x128xf32, #tpu.memory_space<vmem>>, vector<32x128xf32>
    %c0_1 = arith.constant 0 : index
    %c0_2 = arith.constant 0 : index
    %1 = vector.load %arg2[%c0_1, %c0_2] : memref<128x2xf32, #tpu.memory_space<vmem>>, vector<128x2xf32>
    %c0_3 = arith.constant 0 : index
    %c0_4 = arith.constant 0 : index
    %2 = vector.load %arg3[%c0_3, %c0_4] : memref<2x128xf32, #tpu.memory_space<vmem>>, vector<2x128xf32>
    %c0_5 = arith.constant 0 : index
    %c0_6 = arith.constant 0 : index
    %3 = vector.load %arg5[%c0_5, %c0_6] : memref<1x128xf32, #tpu.memory_space<vmem>>, vector<1x128xf32>
    %c0_7 = arith.constant 0 : index
    %c0_8 = arith.constant 0 : index
    %4 = vector.load %arg6[%c0_7, %c0_8] : memref<1x128xf32, #tpu.memory_space<vmem>>, vector<1x128xf32>
    %c0_9 = arith.constant 0 : index
    %c0_10 = arith.constant 0 : index
    %5 = vector.load %arg7[%c0_9, %c0_10] : memref<1x128xf32, #tpu.memory_space<vmem>>, vector<1x128xf32>
    %6 = vector.extract_strided_slice %0 {offsets = [0, 0], sizes = [16, 128], strides = [1, 1]} : vector<32x128xf32> to vector<16x128xf32>
    %cst = arith.constant dense<0.000000e+00> : vector<128xf32>
    %7 = vector.multi_reduction <add>, %6, %cst [0] : vector<16x128xf32> to vector<128xf32>
    %8 = vector.shape_cast %7 : vector<128xf32> to vector<1x128xf32>
    %cst_11 = arith.constant 1.600000e+01 : f32
    %9 = vector.broadcast %cst_11 : f32 to vector<1x128xf32>
    %10 = arith.divf %8, %9 : vector<1x128xf32>
    %11 = vector.broadcast %10 : vector<1x128xf32> to vector<16x128xf32>
    %12 = arith.subf %6, %11 : vector<16x128xf32>
    %13 = vector.broadcast %10 : vector<1x128xf32> to vector<16x128xf32>
    %14 = arith.subf %6, %13 : vector<16x128xf32>
    %15 = arith.mulf %12, %14 : vector<16x128xf32>
    %cst_12 = arith.constant dense<0.000000e+00> : vector<128xf32>
    %16 = vector.multi_reduction <add>, %15, %cst_12 [0] : vector<16x128xf32> to vector<128xf32>
    %17 = vector.shape_cast %16 : vector<128xf32> to vector<1x128xf32>
    %cst_13 = arith.constant 1.600000e+01 : f32
    %18 = vector.broadcast %cst_13 : f32 to vector<1x128xf32>
    %19 = arith.divf %17, %18 : vector<1x128xf32>
    %cst_14 = arith.constant 9.99999974E-6 : f32
    %20 = vector.broadcast %cst_14 : f32 to vector<1x128xf32>
    %21 = arith.addf %19, %20 : vector<1x128xf32>
    %22 = math.rsqrt %21 : vector<1x128xf32>
    %23 = vector.broadcast %10 : vector<1x128xf32> to vector<16x128xf32>
    %24 = arith.subf %6, %23 : vector<16x128xf32>
    %25 = vector.broadcast %22 : vector<1x128xf32> to vector<16x128xf32>
    %26 = arith.mulf %24, %25 : vector<16x128xf32>
    %27 = vector.broadcast %3 : vector<1x128xf32> to vector<16x128xf32>
    %28 = arith.mulf %26, %27 : vector<16x128xf32>
    %29 = vector.broadcast %4 : vector<1x128xf32> to vector<16x128xf32>
    %30 = arith.addf %28, %29 : vector<16x128xf32>
    %cst_15 = arith.constant 9.99999974E-6 : f32
    %31 = vector.broadcast %cst_15 : f32 to vector<1x128xf32>
    %32 = arith.addf %19, %31 : vector<1x128xf32>
    %33 = arith.mulf %32, %22 : vector<1x128xf32>
    %34 = vector.extract_strided_slice %0 {offsets = [16, 0], sizes = [16, 128], strides = [1, 1]} : vector<32x128xf32> to vector<16x128xf32>
    %cst_16 = arith.constant dense<0.000000e+00> : vector<128xf32>
    %35 = vector.multi_reduction <add>, %34, %cst_16 [0] : vector<16x128xf32> to vector<128xf32>
    %36 = vector.shape_cast %35 : vector<128xf32> to vector<1x128xf32>
    %cst_17 = arith.constant 1.600000e+01 : f32
    %37 = vector.broadcast %cst_17 : f32 to vector<1x128xf32>
    %38 = arith.divf %36, %37 : vector<1x128xf32>
    %39 = vector.broadcast %38 : vector<1x128xf32> to vector<16x128xf32>
    %40 = arith.subf %34, %39 : vector<16x128xf32>
    %41 = vector.broadcast %38 : vector<1x128xf32> to vector<16x128xf32>
    %42 = arith.subf %34, %41 : vector<16x128xf32>
    %43 = arith.mulf %40, %42 : vector<16x128xf32>
    %cst_18 = arith.constant dense<0.000000e+00> : vector<128xf32>
    %44 = vector.multi_reduction <add>, %43, %cst_18 [0] : vector<16x128xf32> to vector<128xf32>
    %45 = vector.shape_cast %44 : vector<128xf32> to vector<1x128xf32>
    %cst_19 = arith.constant 1.600000e+01 : f32
    %46 = vector.broadcast %cst_19 : f32 to vector<1x128xf32>
    %47 = arith.divf %45, %46 : vector<1x128xf32>
    %cst_20 = arith.constant 9.99999974E-6 : f32
    %48 = vector.broadcast %cst_20 : f32 to vector<1x128xf32>
    %49 = arith.addf %47, %48 : vector<1x128xf32>
    %50 = math.rsqrt %49 : vector<1x128xf32>
    %51 = vector.broadcast %38 : vector<1x128xf32> to vector<16x128xf32>
    %52 = arith.subf %34, %51 : vector<16x128xf32>
    %53 = vector.broadcast %50 : vector<1x128xf32> to vector<16x128xf32>
    %54 = arith.mulf %52, %53 : vector<16x128xf32>
    %55 = vector.broadcast %3 : vector<1x128xf32> to vector<16x128xf32>
    %56 = arith.mulf %54, %55 : vector<16x128xf32>
    %57 = vector.broadcast %4 : vector<1x128xf32> to vector<16x128xf32>
    %58 = arith.addf %56, %57 : vector<16x128xf32>
    %cst_21 = arith.constant 9.99999974E-6 : f32
    %59 = vector.broadcast %cst_21 : f32 to vector<1x128xf32>
    %60 = arith.addf %47, %59 : vector<1x128xf32>
    %61 = arith.mulf %60, %50 : vector<1x128xf32>
    %62 = tpu.concatenate %30, %58 in 0 : vector<16x128xf32>, vector<16x128xf32> -> vector<32x128xf32>
    %c0_22 = arith.constant 0 : index
    %c0_23 = arith.constant 0 : index
    %c0_24 = arith.constant 0 : index
    %63 = vector.load %arg8[%c0_22, %c0_23, %c0_24] : memref<2x1x128xf32, #tpu.memory_space<vmem>>, vector<1x1x128xf32>
    %64 = vector.shape_cast %63 : vector<1x1x128xf32> to vector<1x128xf32>
    %c0_25 = arith.constant 0 : index
    %c0_26 = arith.constant 0 : index
    %c0_27 = arith.constant 0 : index
    %65 = vector.load %arg9[%c0_25, %c0_26, %c0_27] : memref<2x1x128xf32, #tpu.memory_space<vmem>>, vector<1x1x128xf32>
    %66 = vector.shape_cast %65 : vector<1x1x128xf32> to vector<1x128xf32>
    %cst_28 = arith.constant dense<0.000000e+00> : vector<32x2xf32>
    %67 = tpu.matmul %62, %1, %cst_28 {dimension_numbers = #tpu.dot_dimension_numbers<[1], [0], [0], [1], [0, 0, 1, 1], [], []>} : vector<32x128xf32>, vector<128x2xf32>, vector<32x2xf32> -> vector<32x2xf32>
    %cst_29 = arith.constant dense<0.000000e+00> : vector<32x128xf32>
    %68 = tpu.matmul %67, %2, %cst_29 {dimension_numbers = #tpu.dot_dimension_numbers<[1], [0], [0], [1], [0, 0, 1, 1], [], []>} : vector<32x2xf32>, vector<2x128xf32>, vector<32x128xf32> -> vector<32x128xf32>
    %69 = arith.subf %62, %68 : vector<32x128xf32>
    %70 = arith.mulf %69, %69 : vector<32x128xf32>
    %cst_30 = arith.constant dense<0.000000e+00> : vector<32x2xf32>
    %71 = tpu.matmul %70, %1, %cst_30 {dimension_numbers = #tpu.dot_dimension_numbers<[1], [0], [0], [1], [0, 0, 1, 1], [], []>} : vector<32x128xf32>, vector<128x2xf32>, vector<32x2xf32> -> vector<32x2xf32>
    %cst_31 = arith.constant dense<0.000000e+00> : vector<32x128xf32>
    %72 = tpu.matmul %71, %2, %cst_31 {dimension_numbers = #tpu.dot_dimension_numbers<[1], [0], [0], [1], [0, 0, 1, 1], [], []>} : vector<32x2xf32>, vector<2x128xf32>, vector<32x128xf32> -> vector<32x128xf32>
    %cst_32 = arith.constant 9.99999974E-6 : f32
    %73 = vector.broadcast %cst_32 : f32 to vector<32x128xf32>
    %74 = arith.addf %72, %73 : vector<32x128xf32>
    %75 = math.rsqrt %74 : vector<32x128xf32>
    %76 = arith.mulf %69, %75 : vector<32x128xf32>
    %77 = vector.broadcast %64 : vector<1x128xf32> to vector<32x128xf32>
    %78 = arith.mulf %76, %77 : vector<32x128xf32>
    %79 = vector.broadcast %66 : vector<1x128xf32> to vector<32x128xf32>
    %80 = arith.addf %78, %79 : vector<32x128xf32>
    %81 = vector.extract_strided_slice %80 {offsets = [0, 0], sizes = [16, 128], strides = [1, 1]} : vector<32x128xf32> to vector<16x128xf32>
    %c0_33 = arith.constant 0 : index
    %c0_34 = arith.constant 0 : index
    %c0_35 = arith.constant 0 : index
    %82 = vector.load %arg4[%c0_33, %c0_34, %c0_35] : memref<2x1x128xf32, #tpu.memory_space<vmem>>, vector<1x1x128xf32>
    %83 = vector.shape_cast %82 : vector<1x1x128xf32> to vector<1x128xf32>
    %c0_36 = arith.constant 0 : index
    %c0_37 = arith.constant 0 : index
    %c0_38 = arith.constant 0 : index
    %84 = vector.load %arg10[%c0_36, %c0_37, %c0_38] : memref<4x16x16xf32, #tpu.memory_space<vmem>>, vector<1x16x16xf32>
    %85 = vector.shape_cast %84 : vector<1x16x16xf32> to vector<16x16xf32>
    %cst_39 = arith.constant dense<0.000000e+00> : vector<16x128xf32>
    %86 = tpu.matmul %85, %81, %cst_39 {dimension_numbers = #tpu.dot_dimension_numbers<[1], [0], [0], [1], [0, 0, 1, 1], [], []>} : vector<16x16xf32>, vector<16x128xf32>, vector<16x128xf32> -> vector<16x128xf32>
    %87 = vector.broadcast %83 : vector<1x128xf32> to vector<16x128xf32>
    %88 = arith.mulf %87, %86 : vector<16x128xf32>
    %c1 = arith.constant 1 : index
    %c0_40 = arith.constant 0 : index
    %c0_41 = arith.constant 0 : index
    %89 = vector.load %arg4[%c1, %c0_40, %c0_41] : memref<2x1x128xf32, #tpu.memory_space<vmem>>, vector<1x1x128xf32>
    %90 = vector.shape_cast %89 : vector<1x1x128xf32> to vector<1x128xf32>
    %c1_42 = arith.constant 1 : index
    %c0_43 = arith.constant 0 : index
    %c0_44 = arith.constant 0 : index
    %91 = vector.load %arg10[%c1_42, %c0_43, %c0_44] : memref<4x16x16xf32, #tpu.memory_space<vmem>>, vector<1x16x16xf32>
    %92 = vector.shape_cast %91 : vector<1x16x16xf32> to vector<16x16xf32>
    %cst_45 = arith.constant dense<0.000000e+00> : vector<16x128xf32>
    %93 = tpu.matmul %92, %81, %cst_45 {dimension_numbers = #tpu.dot_dimension_numbers<[1], [0], [0], [1], [0, 0, 1, 1], [], []>} : vector<16x16xf32>, vector<16x128xf32>, vector<16x128xf32> -> vector<16x128xf32>
    %94 = vector.broadcast %90 : vector<1x128xf32> to vector<16x128xf32>
    %95 = arith.mulf %94, %93 : vector<16x128xf32>
    %96 = arith.addf %88, %95 : vector<16x128xf32>
    %c0_46 = arith.constant 0 : index
    %c0_47 = arith.constant 0 : index
    %c0_48 = arith.constant 0 : index
    %97 = vector.load %arg11[%c0_46, %c0_47, %c0_48] : memref<2x16x128xf32, #tpu.memory_space<vmem>>, vector<1x16x128xf32>
    %98 = vector.shape_cast %97 : vector<1x16x128xf32> to vector<16x128xf32>
    %99 = arith.addf %96, %98 : vector<16x128xf32>
    %cst_49 = arith.constant 0.000000e+00 : f32
    %100 = vector.broadcast %cst_49 : f32 to vector<16x128xf32>
    %101 = arith.maximumf %99, %100 : vector<16x128xf32>
    %102 = vector.extract_strided_slice %80 {offsets = [16, 0], sizes = [16, 128], strides = [1, 1]} : vector<32x128xf32> to vector<16x128xf32>
    %c0_50 = arith.constant 0 : index
    %c0_51 = arith.constant 0 : index
    %c0_52 = arith.constant 0 : index
    %103 = vector.load %arg4[%c0_50, %c0_51, %c0_52] : memref<2x1x128xf32, #tpu.memory_space<vmem>>, vector<1x1x128xf32>
    %104 = vector.shape_cast %103 : vector<1x1x128xf32> to vector<1x128xf32>
    %c0_53 = arith.constant 0 : index
    %c0_54 = arith.constant 0 : index
    %c0_55 = arith.constant 0 : index
    %105 = vector.load %arg10[%c0_53, %c0_54, %c0_55] : memref<4x16x16xf32, #tpu.memory_space<vmem>>, vector<1x16x16xf32>
    %106 = vector.shape_cast %105 : vector<1x16x16xf32> to vector<16x16xf32>
    %cst_56 = arith.constant dense<0.000000e+00> : vector<16x128xf32>
    %107 = tpu.matmul %106, %102, %cst_56 {dimension_numbers = #tpu.dot_dimension_numbers<[1], [0], [0], [1], [0, 0, 1, 1], [], []>} : vector<16x16xf32>, vector<16x128xf32>, vector<16x128xf32> -> vector<16x128xf32>
    %108 = vector.broadcast %104 : vector<1x128xf32> to vector<16x128xf32>
    %109 = arith.mulf %108, %107 : vector<16x128xf32>
    %c1_57 = arith.constant 1 : index
    %c0_58 = arith.constant 0 : index
    %c0_59 = arith.constant 0 : index
    %110 = vector.load %arg4[%c1_57, %c0_58, %c0_59] : memref<2x1x128xf32, #tpu.memory_space<vmem>>, vector<1x1x128xf32>
    %111 = vector.shape_cast %110 : vector<1x1x128xf32> to vector<1x128xf32>
    %c1_60 = arith.constant 1 : index
    %c0_61 = arith.constant 0 : index
    %c0_62 = arith.constant 0 : index
    %112 = vector.load %arg10[%c1_60, %c0_61, %c0_62] : memref<4x16x16xf32, #tpu.memory_space<vmem>>, vector<1x16x16xf32>
    %113 = vector.shape_cast %112 : vector<1x16x16xf32> to vector<16x16xf32>
    %cst_63 = arith.constant dense<0.000000e+00> : vector<16x128xf32>
    %114 = tpu.matmul %113, %102, %cst_63 {dimension_numbers = #tpu.dot_dimension_numbers<[1], [0], [0], [1], [0, 0, 1, 1], [], []>} : vector<16x16xf32>, vector<16x128xf32>, vector<16x128xf32> -> vector<16x128xf32>
    %115 = vector.broadcast %111 : vector<1x128xf32> to vector<16x128xf32>
    %116 = arith.mulf %115, %114 : vector<16x128xf32>
    %117 = arith.addf %109, %116 : vector<16x128xf32>
    %c0_64 = arith.constant 0 : index
    %c0_65 = arith.constant 0 : index
    %c0_66 = arith.constant 0 : index
    %118 = vector.load %arg11[%c0_64, %c0_65, %c0_66] : memref<2x16x128xf32, #tpu.memory_space<vmem>>, vector<1x16x128xf32>
    %119 = vector.shape_cast %118 : vector<1x16x128xf32> to vector<16x128xf32>
    %120 = arith.addf %117, %119 : vector<16x128xf32>
    %cst_67 = arith.constant 0.000000e+00 : f32
    %121 = vector.broadcast %cst_67 : f32 to vector<16x128xf32>
    %122 = arith.maximumf %120, %121 : vector<16x128xf32>
    %123 = tpu.concatenate %101, %122 in 0 : vector<16x128xf32>, vector<16x128xf32> -> vector<32x128xf32>
    %124 = arith.addf %62, %123 : vector<32x128xf32>
    %c0_68 = arith.constant 0 : index
    %c0_69 = arith.constant 0 : index
    %c0_70 = arith.constant 0 : index
    %125 = vector.load %arg12[%c0_68, %c0_69, %c0_70] : memref<2x1x128xf32, #tpu.memory_space<vmem>>, vector<1x1x128xf32>
    %126 = vector.shape_cast %125 : vector<1x1x128xf32> to vector<1x128xf32>
    %c0_71 = arith.constant 0 : index
    %c0_72 = arith.constant 0 : index
    %c0_73 = arith.constant 0 : index
    %127 = vector.load %arg13[%c0_71, %c0_72, %c0_73] : memref<2x1x128xf32, #tpu.memory_space<vmem>>, vector<1x1x128xf32>
    %128 = vector.shape_cast %127 : vector<1x1x128xf32> to vector<1x128xf32>
    %cst_74 = arith.constant dense<0.000000e+00> : vector<32x2xf32>
    %129 = tpu.matmul %124, %1, %cst_74 {dimension_numbers = #tpu.dot_dimension_numbers<[1], [0], [0], [1], [0, 0, 1, 1], [], []>} : vector<32x128xf32>, vector<128x2xf32>, vector<32x2xf32> -> vector<32x2xf32>
    %cst_75 = arith.constant dense<0.000000e+00> : vector<32x128xf32>
    %130 = tpu.matmul %129, %2, %cst_75 {dimension_numbers = #tpu.dot_dimension_numbers<[1], [0], [0], [1], [0, 0, 1, 1], [], []>} : vector<32x2xf32>, vector<2x128xf32>, vector<32x128xf32> -> vector<32x128xf32>
    %131 = arith.subf %124, %130 : vector<32x128xf32>
    %132 = arith.mulf %131, %131 : vector<32x128xf32>
    %cst_76 = arith.constant dense<0.000000e+00> : vector<32x2xf32>
    %133 = tpu.matmul %132, %1, %cst_76 {dimension_numbers = #tpu.dot_dimension_numbers<[1], [0], [0], [1], [0, 0, 1, 1], [], []>} : vector<32x128xf32>, vector<128x2xf32>, vector<32x2xf32> -> vector<32x2xf32>
    %cst_77 = arith.constant dense<0.000000e+00> : vector<32x128xf32>
    %134 = tpu.matmul %133, %2, %cst_77 {dimension_numbers = #tpu.dot_dimension_numbers<[1], [0], [0], [1], [0, 0, 1, 1], [], []>} : vector<32x2xf32>, vector<2x128xf32>, vector<32x128xf32> -> vector<32x128xf32>
    %cst_78 = arith.constant 9.99999974E-6 : f32
    %135 = vector.broadcast %cst_78 : f32 to vector<32x128xf32>
    %136 = arith.addf %134, %135 : vector<32x128xf32>
    %137 = math.rsqrt %136 : vector<32x128xf32>
    %138 = arith.mulf %131, %137 : vector<32x128xf32>
    %139 = vector.broadcast %126 : vector<1x128xf32> to vector<32x128xf32>
    %140 = arith.mulf %138, %139 : vector<32x128xf32>
    %141 = vector.broadcast %128 : vector<1x128xf32> to vector<32x128xf32>
    %142 = arith.addf %140, %141 : vector<32x128xf32>
    %c0_79 = arith.constant 0 : index
    %c0_80 = arith.constant 0 : index
    %c0_81 = arith.constant 0 : index
    %143 = vector.load %arg14[%c0_79, %c0_80, %c0_81] : memref<2x128x128xf32, #tpu.memory_space<vmem>>, vector<1x128x128xf32>
    %144 = vector.shape_cast %143 : vector<1x128x128xf32> to vector<128x128xf32>
    %cst_82 = arith.constant dense<0.000000e+00> : vector<32x128xf32>
    %145 = tpu.matmul %142, %144, %cst_82 {dimension_numbers = #tpu.dot_dimension_numbers<[1], [0], [0], [1], [0, 0, 1, 1], [], []>} : vector<32x128xf32>, vector<128x128xf32>, vector<32x128xf32> -> vector<32x128xf32>
    %c0_83 = arith.constant 0 : index
    %c0_84 = arith.constant 0 : index
    %c0_85 = arith.constant 0 : index
    %146 = vector.load %arg15[%c0_83, %c0_84, %c0_85] : memref<2x1x128xf32, #tpu.memory_space<vmem>>, vector<1x1x128xf32>
    %147 = vector.shape_cast %146 : vector<1x1x128xf32> to vector<1x128xf32>
    %148 = vector.broadcast %147 : vector<1x128xf32> to vector<32x128xf32>
    %149 = arith.addf %145, %148 : vector<32x128xf32>
    %cst_86 = arith.constant 0.000000e+00 : f32
    %150 = vector.broadcast %cst_86 : f32 to vector<32x128xf32>
    %151 = arith.maximumf %149, %150 : vector<32x128xf32>
    %c0_87 = arith.constant 0 : index
    %c0_88 = arith.constant 0 : index
    %c0_89 = arith.constant 0 : index
    %152 = vector.load %arg16[%c0_87, %c0_88, %c0_89] : memref<2x128x128xf32, #tpu.memory_space<vmem>>, vector<1x128x128xf32>
    %153 = vector.shape_cast %152 : vector<1x128x128xf32> to vector<128x128xf32>
    %cst_90 = arith.constant dense<0.000000e+00> : vector<32x128xf32>
    %154 = tpu.matmul %151, %153, %cst_90 {dimension_numbers = #tpu.dot_dimension_numbers<[1], [0], [0], [1], [0, 0, 1, 1], [], []>} : vector<32x128xf32>, vector<128x128xf32>, vector<32x128xf32> -> vector<32x128xf32>
    %155 = arith.addf %124, %154 : vector<32x128xf32>
    %c0_91 = arith.constant 0 : index
    %c0_92 = arith.constant 0 : index
    %c0_93 = arith.constant 0 : index
    %156 = vector.load %arg17[%c0_91, %c0_92, %c0_93] : memref<2x1x128xf32, #tpu.memory_space<vmem>>, vector<1x1x128xf32>
    %157 = vector.shape_cast %156 : vector<1x1x128xf32> to vector<1x128xf32>
    %158 = vector.broadcast %157 : vector<1x128xf32> to vector<32x128xf32>
    %159 = arith.addf %155, %158 : vector<32x128xf32>
    %c1_94 = arith.constant 1 : index
    %c0_95 = arith.constant 0 : index
    %c0_96 = arith.constant 0 : index
    %160 = vector.load %arg8[%c1_94, %c0_95, %c0_96] : memref<2x1x128xf32, #tpu.memory_space<vmem>>, vector<1x1x128xf32>
    %161 = vector.shape_cast %160 : vector<1x1x128xf32> to vector<1x128xf32>
    %c1_97 = arith.constant 1 : index
    %c0_98 = arith.constant 0 : index
    %c0_99 = arith.constant 0 : index
    %162 = vector.load %arg9[%c1_97, %c0_98, %c0_99] : memref<2x1x128xf32, #tpu.memory_space<vmem>>, vector<1x1x128xf32>
    %163 = vector.shape_cast %162 : vector<1x1x128xf32> to vector<1x128xf32>
    %cst_100 = arith.constant dense<0.000000e+00> : vector<32x2xf32>
    %164 = tpu.matmul %159, %1, %cst_100 {dimension_numbers = #tpu.dot_dimension_numbers<[1], [0], [0], [1], [0, 0, 1, 1], [], []>} : vector<32x128xf32>, vector<128x2xf32>, vector<32x2xf32> -> vector<32x2xf32>
    %cst_101 = arith.constant dense<0.000000e+00> : vector<32x128xf32>
    %165 = tpu.matmul %164, %2, %cst_101 {dimension_numbers = #tpu.dot_dimension_numbers<[1], [0], [0], [1], [0, 0, 1, 1], [], []>} : vector<32x2xf32>, vector<2x128xf32>, vector<32x128xf32> -> vector<32x128xf32>
    %166 = arith.subf %159, %165 : vector<32x128xf32>
    %167 = arith.mulf %166, %166 : vector<32x128xf32>
    %cst_102 = arith.constant dense<0.000000e+00> : vector<32x2xf32>
    %168 = tpu.matmul %167, %1, %cst_102 {dimension_numbers = #tpu.dot_dimension_numbers<[1], [0], [0], [1], [0, 0, 1, 1], [], []>} : vector<32x128xf32>, vector<128x2xf32>, vector<32x2xf32> -> vector<32x2xf32>
    %cst_103 = arith.constant dense<0.000000e+00> : vector<32x128xf32>
    %169 = tpu.matmul %168, %2, %cst_103 {dimension_numbers = #tpu.dot_dimension_numbers<[1], [0], [0], [1], [0, 0, 1, 1], [], []>} : vector<32x2xf32>, vector<2x128xf32>, vector<32x128xf32> -> vector<32x128xf32>
    %cst_104 = arith.constant 9.99999974E-6 : f32
    %170 = vector.broadcast %cst_104 : f32 to vector<32x128xf32>
    %171 = arith.addf %169, %170 : vector<32x128xf32>
    %172 = math.rsqrt %171 : vector<32x128xf32>
    %173 = arith.mulf %166, %172 : vector<32x128xf32>
    %174 = vector.broadcast %161 : vector<1x128xf32> to vector<32x128xf32>
    %175 = arith.mulf %173, %174 : vector<32x128xf32>
    %176 = vector.broadcast %163 : vector<1x128xf32> to vector<32x128xf32>
    %177 = arith.addf %175, %176 : vector<32x128xf32>
    %178 = vector.extract_strided_slice %177 {offsets = [0, 0], sizes = [16, 128], strides = [1, 1]} : vector<32x128xf32> to vector<16x128xf32>
    %c0_105 = arith.constant 0 : index
    %c0_106 = arith.constant 0 : index
    %c0_107 = arith.constant 0 : index
    %179 = vector.load %arg4[%c0_105, %c0_106, %c0_107] : memref<2x1x128xf32, #tpu.memory_space<vmem>>, vector<1x1x128xf32>
    %180 = vector.shape_cast %179 : vector<1x1x128xf32> to vector<1x128xf32>
    %c2 = arith.constant 2 : index
    %c0_108 = arith.constant 0 : index
    %c0_109 = arith.constant 0 : index
    %181 = vector.load %arg10[%c2, %c0_108, %c0_109] : memref<4x16x16xf32, #tpu.memory_space<vmem>>, vector<1x16x16xf32>
    %182 = vector.shape_cast %181 : vector<1x16x16xf32> to vector<16x16xf32>
    %cst_110 = arith.constant dense<0.000000e+00> : vector<16x128xf32>
    %183 = tpu.matmul %182, %178, %cst_110 {dimension_numbers = #tpu.dot_dimension_numbers<[1], [0], [0], [1], [0, 0, 1, 1], [], []>} : vector<16x16xf32>, vector<16x128xf32>, vector<16x128xf32> -> vector<16x128xf32>
    %184 = vector.broadcast %180 : vector<1x128xf32> to vector<16x128xf32>
    %185 = arith.mulf %184, %183 : vector<16x128xf32>
    %c1_111 = arith.constant 1 : index
    %c0_112 = arith.constant 0 : index
    %c0_113 = arith.constant 0 : index
    %186 = vector.load %arg4[%c1_111, %c0_112, %c0_113] : memref<2x1x128xf32, #tpu.memory_space<vmem>>, vector<1x1x128xf32>
    %187 = vector.shape_cast %186 : vector<1x1x128xf32> to vector<1x128xf32>
    %c3 = arith.constant 3 : index
    %c0_114 = arith.constant 0 : index
    %c0_115 = arith.constant 0 : index
    %188 = vector.load %arg10[%c3, %c0_114, %c0_115] : memref<4x16x16xf32, #tpu.memory_space<vmem>>, vector<1x16x16xf32>
    %189 = vector.shape_cast %188 : vector<1x16x16xf32> to vector<16x16xf32>
    %cst_116 = arith.constant dense<0.000000e+00> : vector<16x128xf32>
    %190 = tpu.matmul %189, %178, %cst_116 {dimension_numbers = #tpu.dot_dimension_numbers<[1], [0], [0], [1], [0, 0, 1, 1], [], []>} : vector<16x16xf32>, vector<16x128xf32>, vector<16x128xf32> -> vector<16x128xf32>
    %191 = vector.broadcast %187 : vector<1x128xf32> to vector<16x128xf32>
    %192 = arith.mulf %191, %190 : vector<16x128xf32>
    %193 = arith.addf %185, %192 : vector<16x128xf32>
    %c1_117 = arith.constant 1 : index
    %c0_118 = arith.constant 0 : index
    %c0_119 = arith.constant 0 : index
    %194 = vector.load %arg11[%c1_117, %c0_118, %c0_119] : memref<2x16x128xf32, #tpu.memory_space<vmem>>, vector<1x16x128xf32>
    %195 = vector.shape_cast %194 : vector<1x16x128xf32> to vector<16x128xf32>
    %196 = arith.addf %193, %195 : vector<16x128xf32>
    %cst_120 = arith.constant 0.000000e+00 : f32
    %197 = vector.broadcast %cst_120 : f32 to vector<16x128xf32>
    %198 = arith.maximumf %196, %197 : vector<16x128xf32>
    %199 = vector.extract_strided_slice %177 {offsets = [16, 0], sizes = [16, 128], strides = [1, 1]} : vector<32x128xf32> to vector<16x128xf32>
    %c0_121 = arith.constant 0 : index
    %c0_122 = arith.constant 0 : index
    %c0_123 = arith.constant 0 : index
    %200 = vector.load %arg4[%c0_121, %c0_122, %c0_123] : memref<2x1x128xf32, #tpu.memory_space<vmem>>, vector<1x1x128xf32>
    %201 = vector.shape_cast %200 : vector<1x1x128xf32> to vector<1x128xf32>
    %c2_124 = arith.constant 2 : index
    %c0_125 = arith.constant 0 : index
    %c0_126 = arith.constant 0 : index
    %202 = vector.load %arg10[%c2_124, %c0_125, %c0_126] : memref<4x16x16xf32, #tpu.memory_space<vmem>>, vector<1x16x16xf32>
    %203 = vector.shape_cast %202 : vector<1x16x16xf32> to vector<16x16xf32>
    %cst_127 = arith.constant dense<0.000000e+00> : vector<16x128xf32>
    %204 = tpu.matmul %203, %199, %cst_127 {dimension_numbers = #tpu.dot_dimension_numbers<[1], [0], [0], [1], [0, 0, 1, 1], [], []>} : vector<16x16xf32>, vector<16x128xf32>, vector<16x128xf32> -> vector<16x128xf32>
    %205 = vector.broadcast %201 : vector<1x128xf32> to vector<16x128xf32>
    %206 = arith.mulf %205, %204 : vector<16x128xf32>
    %c1_128 = arith.constant 1 : index
    %c0_129 = arith.constant 0 : index
    %c0_130 = arith.constant 0 : index
    %207 = vector.load %arg4[%c1_128, %c0_129, %c0_130] : memref<2x1x128xf32, #tpu.memory_space<vmem>>, vector<1x1x128xf32>
    %208 = vector.shape_cast %207 : vector<1x1x128xf32> to vector<1x128xf32>
    %c3_131 = arith.constant 3 : index
    %c0_132 = arith.constant 0 : index
    %c0_133 = arith.constant 0 : index
    %209 = vector.load %arg10[%c3_131, %c0_132, %c0_133] : memref<4x16x16xf32, #tpu.memory_space<vmem>>, vector<1x16x16xf32>
    %210 = vector.shape_cast %209 : vector<1x16x16xf32> to vector<16x16xf32>
    %cst_134 = arith.constant dense<0.000000e+00> : vector<16x128xf32>
    %211 = tpu.matmul %210, %199, %cst_134 {dimension_numbers = #tpu.dot_dimension_numbers<[1], [0], [0], [1], [0, 0, 1, 1], [], []>} : vector<16x16xf32>, vector<16x128xf32>, vector<16x128xf32> -> vector<16x128xf32>
    %212 = vector.broadcast %208 : vector<1x128xf32> to vector<16x128xf32>
    %213 = arith.mulf %212, %211 : vector<16x128xf32>
    %214 = arith.addf %206, %213 : vector<16x128xf32>
    %c1_135 = arith.constant 1 : index
    %c0_136 = arith.constant 0 : index
    %c0_137 = arith.constant 0 : index
    %215 = vector.load %arg11[%c1_135, %c0_136, %c0_137] : memref<2x16x128xf32, #tpu.memory_space<vmem>>, vector<1x16x128xf32>
    %216 = vector.shape_cast %215 : vector<1x16x128xf32> to vector<16x128xf32>
    %217 = arith.addf %214, %216 : vector<16x128xf32>
    %cst_138 = arith.constant 0.000000e+00 : f32
    %218 = vector.broadcast %cst_138 : f32 to vector<16x128xf32>
    %219 = arith.maximumf %217, %218 : vector<16x128xf32>
    %220 = tpu.concatenate %198, %219 in 0 : vector<16x128xf32>, vector<16x128xf32> -> vector<32x128xf32>
    %221 = arith.addf %159, %220 : vector<32x128xf32>
    %c1_139 = arith.constant 1 : index
    %c0_140 = arith.constant 0 : index
    %c0_141 = arith.constant 0 : index
    %222 = vector.load %arg12[%c1_139, %c0_140, %c0_141] : memref<2x1x128xf32, #tpu.memory_space<vmem>>, vector<1x1x128xf32>
    %223 = vector.shape_cast %222 : vector<1x1x128xf32> to vector<1x128xf32>
    %c1_142 = arith.constant 1 : index
    %c0_143 = arith.constant 0 : index
    %c0_144 = arith.constant 0 : index
    %224 = vector.load %arg13[%c1_142, %c0_143, %c0_144] : memref<2x1x128xf32, #tpu.memory_space<vmem>>, vector<1x1x128xf32>
    %225 = vector.shape_cast %224 : vector<1x1x128xf32> to vector<1x128xf32>
    %cst_145 = arith.constant dense<0.000000e+00> : vector<32x2xf32>
    %226 = tpu.matmul %221, %1, %cst_145 {dimension_numbers = #tpu.dot_dimension_numbers<[1], [0], [0], [1], [0, 0, 1, 1], [], []>} : vector<32x128xf32>, vector<128x2xf32>, vector<32x2xf32> -> vector<32x2xf32>
    %cst_146 = arith.constant dense<0.000000e+00> : vector<32x128xf32>
    %227 = tpu.matmul %226, %2, %cst_146 {dimension_numbers = #tpu.dot_dimension_numbers<[1], [0], [0], [1], [0, 0, 1, 1], [], []>} : vector<32x2xf32>, vector<2x128xf32>, vector<32x128xf32> -> vector<32x128xf32>
    %228 = arith.subf %221, %227 : vector<32x128xf32>
    %229 = arith.mulf %228, %228 : vector<32x128xf32>
    %cst_147 = arith.constant dense<0.000000e+00> : vector<32x2xf32>
    %230 = tpu.matmul %229, %1, %cst_147 {dimension_numbers = #tpu.dot_dimension_numbers<[1], [0], [0], [1], [0, 0, 1, 1], [], []>} : vector<32x128xf32>, vector<128x2xf32>, vector<32x2xf32> -> vector<32x2xf32>
    %cst_148 = arith.constant dense<0.000000e+00> : vector<32x128xf32>
    %231 = tpu.matmul %230, %2, %cst_148 {dimension_numbers = #tpu.dot_dimension_numbers<[1], [0], [0], [1], [0, 0, 1, 1], [], []>} : vector<32x2xf32>, vector<2x128xf32>, vector<32x128xf32> -> vector<32x128xf32>
    %cst_149 = arith.constant 9.99999974E-6 : f32
    %232 = vector.broadcast %cst_149 : f32 to vector<32x128xf32>
    %233 = arith.addf %231, %232 : vector<32x128xf32>
    %234 = math.rsqrt %233 : vector<32x128xf32>
    %235 = arith.mulf %228, %234 : vector<32x128xf32>
    %236 = vector.broadcast %223 : vector<1x128xf32> to vector<32x128xf32>
    %237 = arith.mulf %235, %236 : vector<32x128xf32>
    %238 = vector.broadcast %225 : vector<1x128xf32> to vector<32x128xf32>
    %239 = arith.addf %237, %238 : vector<32x128xf32>
    %c1_150 = arith.constant 1 : index
    %c0_151 = arith.constant 0 : index
    %c0_152 = arith.constant 0 : index
    %240 = vector.load %arg14[%c1_150, %c0_151, %c0_152] : memref<2x128x128xf32, #tpu.memory_space<vmem>>, vector<1x128x128xf32>
    %241 = vector.shape_cast %240 : vector<1x128x128xf32> to vector<128x128xf32>
    %cst_153 = arith.constant dense<0.000000e+00> : vector<32x128xf32>
    %242 = tpu.matmul %239, %241, %cst_153 {dimension_numbers = #tpu.dot_dimension_numbers<[1], [0], [0], [1], [0, 0, 1, 1], [], []>} : vector<32x128xf32>, vector<128x128xf32>, vector<32x128xf32> -> vector<32x128xf32>
    %c1_154 = arith.constant 1 : index
    %c0_155 = arith.constant 0 : index
    %c0_156 = arith.constant 0 : index
    %243 = vector.load %arg15[%c1_154, %c0_155, %c0_156] : memref<2x1x128xf32, #tpu.memory_space<vmem>>, vector<1x1x128xf32>
    %244 = vector.shape_cast %243 : vector<1x1x128xf32> to vector<1x128xf32>
    %245 = vector.broadcast %244 : vector<1x128xf32> to vector<32x128xf32>
    %246 = arith.addf %242, %245 : vector<32x128xf32>
    %cst_157 = arith.constant 0.000000e+00 : f32
    %247 = vector.broadcast %cst_157 : f32 to vector<32x128xf32>
    %248 = arith.maximumf %246, %247 : vector<32x128xf32>
    %c1_158 = arith.constant 1 : index
    %c0_159 = arith.constant 0 : index
    %c0_160 = arith.constant 0 : index
    %249 = vector.load %arg16[%c1_158, %c0_159, %c0_160] : memref<2x128x128xf32, #tpu.memory_space<vmem>>, vector<1x128x128xf32>
    %250 = vector.shape_cast %249 : vector<1x128x128xf32> to vector<128x128xf32>
    %cst_161 = arith.constant dense<0.000000e+00> : vector<32x128xf32>
    %251 = tpu.matmul %248, %250, %cst_161 {dimension_numbers = #tpu.dot_dimension_numbers<[1], [0], [0], [1], [0, 0, 1, 1], [], []>} : vector<32x128xf32>, vector<128x128xf32>, vector<32x128xf32> -> vector<32x128xf32>
    %252 = arith.addf %221, %251 : vector<32x128xf32>
    %c1_162 = arith.constant 1 : index
    %c0_163 = arith.constant 0 : index
    %c0_164 = arith.constant 0 : index
    %253 = vector.load %arg17[%c1_162, %c0_163, %c0_164] : memref<2x1x128xf32, #tpu.memory_space<vmem>>, vector<1x1x128xf32>
    %254 = vector.shape_cast %253 : vector<1x1x128xf32> to vector<1x128xf32>
    %255 = vector.broadcast %254 : vector<1x128xf32> to vector<32x128xf32>
    %256 = arith.addf %252, %255 : vector<32x128xf32>
    %257 = vector.extract_strided_slice %256 {offsets = [0, 0], sizes = [16, 128], strides = [1, 1]} : vector<32x128xf32> to vector<16x128xf32>
    %c0_165 = arith.constant 0 : index
    %c0_166 = arith.constant 0 : index
    %c0_167 = arith.constant 0 : index
    %258 = vector.load %arg4[%c0_165, %c0_166, %c0_167] : memref<2x1x128xf32, #tpu.memory_space<vmem>>, vector<1x1x128xf32>
    %259 = vector.shape_cast %258 : vector<1x1x128xf32> to vector<1x128xf32>
    %c0_168 = arith.constant 0 : index
    %c0_169 = arith.constant 0 : index
    %c0_170 = arith.constant 0 : index
    %260 = vector.load %arg18[%c0_168, %c0_169, %c0_170] : memref<2x8x16xf32, #tpu.memory_space<vmem>>, vector<1x8x16xf32>
    %261 = vector.shape_cast %260 : vector<1x8x16xf32> to vector<8x16xf32>
    %cst_171 = arith.constant dense<0.000000e+00> : vector<8x128xf32>
    %262 = tpu.matmul %261, %257, %cst_171 {dimension_numbers = #tpu.dot_dimension_numbers<[1], [0], [0], [1], [0, 0, 1, 1], [], []>} : vector<8x16xf32>, vector<16x128xf32>, vector<8x128xf32> -> vector<8x128xf32>
    %263 = vector.broadcast %259 : vector<1x128xf32> to vector<8x128xf32>
    %264 = arith.mulf %263, %262 : vector<8x128xf32>
    %c1_172 = arith.constant 1 : index
    %c0_173 = arith.constant 0 : index
    %c0_174 = arith.constant 0 : index
    %265 = vector.load %arg4[%c1_172, %c0_173, %c0_174] : memref<2x1x128xf32, #tpu.memory_space<vmem>>, vector<1x1x128xf32>
    %266 = vector.shape_cast %265 : vector<1x1x128xf32> to vector<1x128xf32>
    %c1_175 = arith.constant 1 : index
    %c0_176 = arith.constant 0 : index
    %c0_177 = arith.constant 0 : index
    %267 = vector.load %arg18[%c1_175, %c0_176, %c0_177] : memref<2x8x16xf32, #tpu.memory_space<vmem>>, vector<1x8x16xf32>
    %268 = vector.shape_cast %267 : vector<1x8x16xf32> to vector<8x16xf32>
    %cst_178 = arith.constant dense<0.000000e+00> : vector<8x128xf32>
    %269 = tpu.matmul %268, %257, %cst_178 {dimension_numbers = #tpu.dot_dimension_numbers<[1], [0], [0], [1], [0, 0, 1, 1], [], []>} : vector<8x16xf32>, vector<16x128xf32>, vector<8x128xf32> -> vector<8x128xf32>
    %270 = vector.broadcast %266 : vector<1x128xf32> to vector<8x128xf32>
    %271 = arith.mulf %270, %269 : vector<8x128xf32>
    %272 = arith.addf %264, %271 : vector<8x128xf32>
    %c0_179 = arith.constant 0 : index
    %c0_180 = arith.constant 0 : index
    %273 = vector.load %arg19[%c0_179, %c0_180] : memref<8x128xf32, #tpu.memory_space<vmem>>, vector<8x128xf32>
    %274 = arith.addf %272, %273 : vector<8x128xf32>
    %275 = vector.broadcast %4 : vector<1x128xf32> to vector<8x128xf32>
    %276 = arith.subf %274, %275 : vector<8x128xf32>
    %277 = vector.broadcast %5 : vector<1x128xf32> to vector<8x128xf32>
    %278 = arith.mulf %276, %277 : vector<8x128xf32>
    %279 = vector.broadcast %33 : vector<1x128xf32> to vector<8x128xf32>
    %280 = arith.mulf %278, %279 : vector<8x128xf32>
    %281 = vector.broadcast %10 : vector<1x128xf32> to vector<8x128xf32>
    %282 = arith.addf %280, %281 : vector<8x128xf32>
    %c0_181 = arith.constant 0 : index
    %c0_182 = arith.constant 0 : index
    %283 = vector.load %arg20[%c0_181, %c0_182] : memref<16x128xf32, #tpu.memory_space<vmem>>, vector<8x128xf32>
    tpu.vector_store %arg20[%c0_181, %c0_182], %282 {strides = array<i32>} : memref<16x128xf32, #tpu.memory_space<vmem>>, vector<8x128xf32>,
    %284 = vector.extract_strided_slice %256 {offsets = [16, 0], sizes = [16, 128], strides = [1, 1]} : vector<32x128xf32> to vector<16x128xf32>
    %c0_183 = arith.constant 0 : index
    %c0_184 = arith.constant 0 : index
    %c0_185 = arith.constant 0 : index
    %285 = vector.load %arg4[%c0_183, %c0_184, %c0_185] : memref<2x1x128xf32, #tpu.memory_space<vmem>>, vector<1x1x128xf32>
    %286 = vector.shape_cast %285 : vector<1x1x128xf32> to vector<1x128xf32>
    %c0_186 = arith.constant 0 : index
    %c0_187 = arith.constant 0 : index
    %c0_188 = arith.constant 0 : index
    %287 = vector.load %arg18[%c0_186, %c0_187, %c0_188] : memref<2x8x16xf32, #tpu.memory_space<vmem>>, vector<1x8x16xf32>
    %288 = vector.shape_cast %287 : vector<1x8x16xf32> to vector<8x16xf32>
    %cst_189 = arith.constant dense<0.000000e+00> : vector<8x128xf32>
    %289 = tpu.matmul %288, %284, %cst_189 {dimension_numbers = #tpu.dot_dimension_numbers<[1], [0], [0], [1], [0, 0, 1, 1], [], []>} : vector<8x16xf32>, vector<16x128xf32>, vector<8x128xf32> -> vector<8x128xf32>
    %290 = vector.broadcast %286 : vector<1x128xf32> to vector<8x128xf32>
    %291 = arith.mulf %290, %289 : vector<8x128xf32>
    %c1_190 = arith.constant 1 : index
    %c0_191 = arith.constant 0 : index
    %c0_192 = arith.constant 0 : index
    %292 = vector.load %arg4[%c1_190, %c0_191, %c0_192] : memref<2x1x128xf32, #tpu.memory_space<vmem>>, vector<1x1x128xf32>
    %293 = vector.shape_cast %292 : vector<1x1x128xf32> to vector<1x128xf32>
    %c1_193 = arith.constant 1 : index
    %c0_194 = arith.constant 0 : index
    %c0_195 = arith.constant 0 : index
    %294 = vector.load %arg18[%c1_193, %c0_194, %c0_195] : memref<2x8x16xf32, #tpu.memory_space<vmem>>, vector<1x8x16xf32>
    %295 = vector.shape_cast %294 : vector<1x8x16xf32> to vector<8x16xf32>
    %cst_196 = arith.constant dense<0.000000e+00> : vector<8x128xf32>
    %296 = tpu.matmul %295, %284, %cst_196 {dimension_numbers = #tpu.dot_dimension_numbers<[1], [0], [0], [1], [0, 0, 1, 1], [], []>} : vector<8x16xf32>, vector<16x128xf32>, vector<8x128xf32> -> vector<8x128xf32>
    %297 = vector.broadcast %293 : vector<1x128xf32> to vector<8x128xf32>
    %298 = arith.mulf %297, %296 : vector<8x128xf32>
    %299 = arith.addf %291, %298 : vector<8x128xf32>
    %c0_197 = arith.constant 0 : index
    %c0_198 = arith.constant 0 : index
    %300 = vector.load %arg19[%c0_197, %c0_198] : memref<8x128xf32, #tpu.memory_space<vmem>>, vector<8x128xf32>
    %301 = arith.addf %299, %300 : vector<8x128xf32>
    %302 = vector.broadcast %4 : vector<1x128xf32> to vector<8x128xf32>
    %303 = arith.subf %301, %302 : vector<8x128xf32>
    %304 = vector.broadcast %5 : vector<1x128xf32> to vector<8x128xf32>
    %305 = arith.mulf %303, %304 : vector<8x128xf32>
    %306 = vector.broadcast %61 : vector<1x128xf32> to vector<8x128xf32>
    %307 = arith.mulf %305, %306 : vector<8x128xf32>
    %308 = vector.broadcast %38 : vector<1x128xf32> to vector<8x128xf32>
    %309 = arith.addf %307, %308 : vector<8x128xf32>
    %c8 = arith.constant 8 : index
    %c0_199 = arith.constant 0 : index
    %310 = vector.load %arg20[%c8, %c0_199] : memref<16x128xf32, #tpu.memory_space<vmem>>, vector<8x128xf32>
    tpu.vector_store %arg20[%c8, %c0_199], %309 {strides = array<i32>} : memref<16x128xf32, #tpu.memory_space<vmem>>, vector<8x128xf32>,
    return
  }
  func.func @transform_0(%arg0: i32) -> (i32, i32) {
    %c0_i32 = arith.constant 0 : i32
    %c0_i32_0 = arith.constant 0 : i32
    %c0_i32_1 = arith.constant 0 : i32
    return %c0_i32, %c0_i32_0 : i32, i32
  }
  func.func @transform_1(%arg0: i32) -> (i32, i32) {
    %c0_i32 = arith.constant 0 : i32
    %c0_i32_0 = arith.constant 0 : i32
    %c0_i32_1 = arith.constant 0 : i32
    return %c0_i32, %c0_i32_0 : i32, i32
  }
  func.func @transform_2(%arg0: i32) -> (i32, i32) {
    %c0_i32 = arith.constant 0 : i32
    %c0_i32_0 = arith.constant 0 : i32
    %c0_i32_1 = arith.constant 0 : i32
    return %c0_i32, %c0_i32_0 : i32, i32
  }
  func.func @transform_3(%arg0: i32) -> (i32, i32, i32) {
    %c0_i32 = arith.constant 0 : i32
    %c0_i32_0 = arith.constant 0 : i32
    %c0_i32_1 = arith.constant 0 : i32
    %c0_i32_2 = arith.constant 0 : i32
    return %c0_i32, %c0_i32_0, %c0_i32_1 : i32, i32, i32
  }
  func.func @transform_4(%arg0: i32) -> (i32, i32) {
    %c0_i32 = arith.constant 0 : i32
    %c0_i32_0 = arith.constant 0 : i32
    %c0_i32_1 = arith.constant 0 : i32
    return %c0_i32, %c0_i32_0 : i32, i32
  }
  func.func @transform_5(%arg0: i32) -> (i32, i32) {
    %c0_i32 = arith.constant 0 : i32
    %c0_i32_0 = arith.constant 0 : i32
    %c0_i32_1 = arith.constant 0 : i32
    return %c0_i32, %c0_i32_0 : i32, i32
  }
  func.func @transform_6(%arg0: i32) -> (i32, i32) {
    %c0_i32 = arith.constant 0 : i32
    %c0_i32_0 = arith.constant 0 : i32
    %c0_i32_1 = arith.constant 0 : i32
    return %c0_i32, %c0_i32_0 : i32, i32
  }
  func.func @transform_7(%arg0: i32) -> (i32, i32, i32) {
    %c0_i32 = arith.constant 0 : i32
    %c0_i32_0 = arith.constant 0 : i32
    %c0_i32_1 = arith.constant 0 : i32
    %c0_i32_2 = arith.constant 0 : i32
    return %c0_i32, %c0_i32_0, %c0_i32_1 : i32, i32, i32
  }
  func.func @transform_8(%arg0: i32) -> (i32, i32, i32) {
    %c0_i32 = arith.constant 0 : i32
    %c0_i32_0 = arith.constant 0 : i32
    %c0_i32_1 = arith.constant 0 : i32
    %c0_i32_2 = arith.constant 0 : i32
    return %c0_i32, %c0_i32_0, %c0_i32_1 : i32, i32, i32
  }
  func.func @transform_9(%arg0: i32) -> (i32, i32, i32) {
    %c0_i32 = arith.constant 0 : i32
    %c0_i32_0 = arith.constant 0 : i32
    %c0_i32_1 = arith.constant 0 : i32
    %c0_i32_2 = arith.constant 0 : i32
    return %c0_i32, %c0_i32_0, %c0_i32_1 : i32, i32, i32
  }
  func.func @transform_10(%arg0: i32) -> (i32, i32, i32) {
    %c0_i32 = arith.constant 0 : i32
    %c0_i32_0 = arith.constant 0 : i32
    %c0_i32_1 = arith.constant 0 : i32
    %c0_i32_2 = arith.constant 0 : i32
    return %c0_i32, %c0_i32_0, %c0_i32_1 : i32, i32, i32
  }
  func.func @transform_11(%arg0: i32) -> (i32, i32, i32) {
    %c0_i32 = arith.constant 0 : i32
    %c0_i32_0 = arith.constant 0 : i32
    %c0_i32_1 = arith.constant 0 : i32
    %c0_i32_2 = arith.constant 0 : i32
    return %c0_i32, %c0_i32_0, %c0_i32_1 : i32, i32, i32
  }
  func.func @transform_12(%arg0: i32) -> (i32, i32, i32) {
    %c0_i32 = arith.constant 0 : i32
    %c0_i32_0 = arith.constant 0 : i32
    %c0_i32_1 = arith.constant 0 : i32
    %c0_i32_2 = arith.constant 0 : i32
    return %c0_i32, %c0_i32_0, %c0_i32_1 : i32, i32, i32
  }
  func.func @transform_13(%arg0: i32) -> (i32, i32, i32) {
    %c0_i32 = arith.constant 0 : i32
    %c0_i32_0 = arith.constant 0 : i32
    %c0_i32_1 = arith.constant 0 : i32
    %c0_i32_2 = arith.constant 0 : i32
    return %c0_i32, %c0_i32_0, %c0_i32_1 : i32, i32, i32
  }
  func.func @transform_14(%arg0: i32) -> (i32, i32, i32) {
    %c0_i32 = arith.constant 0 : i32
    %c0_i32_0 = arith.constant 0 : i32
    %c0_i32_1 = arith.constant 0 : i32
    %c0_i32_2 = arith.constant 0 : i32
    return %c0_i32, %c0_i32_0, %c0_i32_1 : i32, i32, i32
  }
  func.func @transform_15(%arg0: i32) -> (i32, i32, i32) {
    %c0_i32 = arith.constant 0 : i32
    %c0_i32_0 = arith.constant 0 : i32
    %c0_i32_1 = arith.constant 0 : i32
    %c0_i32_2 = arith.constant 0 : i32
    return %c0_i32, %c0_i32_0, %c0_i32_1 : i32, i32, i32
  }
  func.func @transform_16(%arg0: i32) -> (i32, i32, i32) {
    %c0_i32 = arith.constant 0 : i32
    %c0_i32_0 = arith.constant 0 : i32
    %c0_i32_1 = arith.constant 0 : i32
    %c0_i32_2 = arith.constant 0 : i32
    return %c0_i32, %c0_i32_0, %c0_i32_1 : i32, i32, i32
  }
  func.func @transform_17(%arg0: i32) -> (i32, i32, i32) {
    %c0_i32 = arith.constant 0 : i32
    %c0_i32_0 = arith.constant 0 : i32
    %c0_i32_1 = arith.constant 0 : i32
    %c0_i32_2 = arith.constant 0 : i32
    return %c0_i32, %c0_i32_0, %c0_i32_1 : i32, i32, i32
  }
  func.func @transform_18(%arg0: i32) -> (i32, i32) {
    %c0_i32 = arith.constant 0 : i32
    %c0_i32_0 = arith.constant 0 : i32
    %c0_i32_1 = arith.constant 0 : i32
    return %c0_i32, %c0_i32_0 : i32, i32
  }
  func.func @transform_19(%arg0: i32) -> (i32, i32) {
    %c0_i32 = arith.constant 0 : i32
    %c0_i32_0 = arith.constant 0 : i32
    %c0_i32_1 = arith.constant 0 : i32
    return %c0_i32, %c0_i32_0 : i32, i32
  }
}

</mosaic_0001>

<bundles_post_ra>
// kernel: tpu_custom_call.1
= control target key start
LH: loop header
LB: loop body
LE: loop exit
PB: predicated region body
PF: predicated region fallthrough
CT: control target
= control target key end

     0   :  { %s5709_s0 = inlined_call_operand.vmem [shape: f32[32,128], index: 0, kind: input, shape index: {}]   ;;  %s5710_s1 = inlined_call_operand.vmem [shape: f32[128,2], index: 1, kind: input, shape index: {}]   ;;  %s5711_s2 = inlined_call_operand.hbm [shape: f32[2,128], index: 2, kind: input, shape index: {}]   ;;  %s5712_s3 = inlined_call_operand.hbm [shape: f32[2,1,128], index: 3, kind: input, shape index: {}]   ;;  %s5713_s4 = inlined_call_operand.hbm [shape: f32[1,128], index: 4, kind: input, shape index: {}]   ;;  %s5714_s5 = inlined_call_operand.hbm [shape: f32[1,128], index: 5, kind: input, shape index: {}]   ;;  %s5715_s6 = inlined_call_operand.hbm [shape: f32[1,128], index: 6, kind: input, shape index: {}]   ;;  %s5716_s7 = inlined_call_operand.hbm [shape: f32[2,1,128], index: 7, kind: input, shape index: {}]   ;;  %s5717_s8 = inlined_call_operand.hbm [shape: f32[2,1,128], index: 8, kind: input, shape index: {}]   ;;  %s5718_s9 = inlined_call_operand.vmem [shape: f32[4,16,16], index: 9, kind: input, shape index: {}]   ;;  %s5719_s10 = inlined_call_operand.vmem [shape: f32[2,16,128], index: 10, kind: input, shape index: {}]   ;;  %s5720_s11 = inlined_call_operand.hbm [shape: f32[2,1,128], index: 11, kind: input, shape index: {}]   ;;  %s5721_s12 = inlined_call_operand.hbm [shape: f32[2,1,128], index: 12, kind: input, shape index: {}]   ;;  %s5722_s13 = inlined_call_operand.hbm [shape: f32[2,128,128], index: 13, kind: input, shape index: {}]   ;;  %s5723_s14 = inlined_call_operand.vmem [shape: f32[2,1,128], index: 14, kind: input, shape index: {}]   ;;  %s5724_s15 = inlined_call_operand.hbm [shape: f32[2,128,128], index: 15, kind: input, shape index: {}]   ;;  %s5725_s16 = inlined_call_operand.vmem [shape: f32[2,1,128], index: 16, kind: input, shape index: {}]   ;;  %s5726_s17 = inlined_call_operand.vmem [shape: f32[2,8,16], index: 17, kind: input, shape index: {}]   ;;  %s5727_s18 = inlined_call_operand.vmem [shape: f32[8,128], index: 18, kind: input, shape index: {}]   ;;  %s5728_s19 = inlined_call_operand.hbm [shape: f32[16,128], index: 19, kind: output, shape index: {}]  }
   0x1   :  { %5731 = sst [smem:[#allocation28_spill]] %s5709_s0 }
   0x2   :  { %5732 = sst [smem:[#allocation29_spill]] %s5710_s1 }
   0x3   :  { %5733 = sst [smem:[#allocation30_spill]] %s5711_s2 }
   0x4   :  { %5734 = sst [smem:[#allocation31_spill]] %s5712_s3 }
   0x5   :  { %24 = vsyncpa [#allocation3], 0 }
   0x6   :  { %25 = vsyncpa [#allocation6], 0 }
   0x7   :  { %26 = vsyncpa [#allocation9], 0 }
   0x8   :  { %27 = vsyncpa [#allocation12], 0 }
   0x9   :  { %28 = vsyncpa [#allocation15], 0 }
   0xa   :  { %29 = vsyncpa [#allocation18], 0 }
   0xb   :  { %30 = vsyncpa [#allocation4], 0  ;;  %s4786_s0 = smov [#allocation5]  }
   0xc   :  { %s50_s30 = sshll.u32 %s4786_s0, 4  ;;  %s51_s30 = int_to_ptr.vmem [resolvable:$true] %s50_s30 }
   0xd   :  { %s4540_s20 = scalar_lea.vmem %s51_s30, 32  ;;  %p4545_p1 = scmp.lt.s32.totalorder %s51_s30, %s51_s30 }
   0xe   :  { %p4541_p0 = scmp.ne.s32.totalorder %s51_s30, %s4540_s20  ;;  %p4546_p2 = scmp.lt.s32.totalorder %s4540_s20, %s4540_s20 }
  0x10   :  { %p4547_p3 = por %p4546_p2, %p4545_p1 }
  0x12   :  { %p4548_p4 = pnand %p4547_p3, %p4541_p0 }
  0x14   :  { %4551 = shalt.err (!%p4548_p4)
}
  0x15   :  { %s4787_s21 = smov 16   ;;  %s4788_s1 = smov 1  }
  0x16   :  { %s5735_s23 = sld [smem:[#allocation31_spill]]  ;;  %s4789_s24 = smov [#allocation8]  }
  0x17   :  { %s73_s25 = sshll.u32 %s4789_s24, 4  ;;  %s4790_s3 = smov [#allocation11]   ;;  %s74_s25 = int_to_ptr.vmem [resolvable:$true] %s73_s25 }
  0x18   :  { %s92_s26 = sshll.u32 %s4790_s3, 4  ;;  %s4560_s27 = scalar_lea.vmem %s74_s25, 16  ;;  %s93_s26 = int_to_ptr.vmem [resolvable:$true] %s92_s26 }
  0x19   :  { %p4561_p5 = scmp.ne.s32.totalorder %s74_s25, %s4560_s27  ;;  %s4564_s28 = scalar_lea.vmem %s74_s25, 32 }
  0x1a   :  { %p4565_p6 = scmp.lt.s32.totalorder %s74_s25, %s74_s25  ;;  %p4566_p7 = scmp.lt.s32.totalorder %s4564_s28, %s4560_s27 }
  0x1c   :  { %56 = dma.hbm_to_vmem [thread:$0]  %s5735_s23, 32, %s51_s30, [#allocation6], %s4787_s21, %s4787_s21, %s4788_s1  }
  0x1d   :  { %p4567_p8 = por %p4566_p7, %p4565_p6 }
  0x1f   :  { %p4568_p9 = pnand %p4567_p8, %p4561_p5 }
  0x21   :  { %4571 = shalt.err (!%p4568_p9)
}
  0x22   :  { %76 = dma.hbm_to_vmem [thread:$0]  %s5714_s5, 16, %s74_s25, [#allocation9]  }
  0x23   :  { %s4580_s20 = scalar_lea.vmem %s93_s26, 32  ;;  %p4585_p11 = scmp.lt.s32.totalorder %s93_s26, %s93_s26 }
  0x24   :  { %p4581_p10 = scmp.ne.s32.totalorder %s93_s26, %s4580_s20  ;;  %p4586_p12 = scmp.lt.s32.totalorder %s4580_s20, %s4580_s20 }
  0x26   :  { %p4587_p13 = por %p4586_p12, %p4585_p11 }
  0x28   :  { %p4588_p0 = pnand %p4587_p13, %p4581_p10 }
  0x2a   :  { %4591 = shalt.err (!%p4588_p0)
}
  0x2b   :  { %98 = dma.hbm_to_vmem [thread:$0]  %s5716_s7, 32, %s93_s26, [#allocation12], %s4787_s21, %s4787_s21, %s4788_s1  }
  0x2c   :  { %s4791_s2 = smov [#allocation14]   ;;  %s4792_s24 = smov [#allocation17]  }
  0x2d   :  { %s120_s23 = sshll.u32 %s4791_s2, 4  ;;  %s144_s5 = sshll.u32 %s4792_s24, 4  ;;  %s121_s23 = int_to_ptr.vmem [resolvable:$true] %s120_s23  ;;  %s145_s5 = int_to_ptr.vmem [resolvable:$true] %s144_s5 }
  0x2e   :  { %s4600_s25 = scalar_lea.vmem %s121_s23, 32  ;;  %p4605_p2 = scmp.lt.s32.totalorder %s121_s23, %s121_s23 }
  0x2f   :  { %p4601_p1 = scmp.ne.s32.totalorder %s121_s23, %s4600_s25  ;;  %p4606_p3 = scmp.lt.s32.totalorder %s4600_s25, %s4600_s25 }
  0x31   :  { %p4607_p4 = por %p4606_p3, %p4605_p2 }
  0x33   :  { %p4608_p5 = pnand %p4607_p4, %p4601_p1 }
  0x35   :  { %4611 = shalt.err (!%p4608_p5)
}
  0x36   :  { %126 = dma.hbm_to_vmem [thread:$0]  %s5720_s11, 32, %s121_s23, [#allocation15], %s4787_s21, %s4787_s21, %s4788_s1  }
  0x37   :  { %s4620_s7 = scalar_lea.vmem %s145_s5, 4096  ;;  %p4625_p7 = scmp.lt.s32.totalorder %s145_s5, %s145_s5 }
  0x38   :  { %p4621_p6 = scmp.ne.s32.totalorder %s145_s5, %s4620_s7  ;;  %p4626_p8 = scmp.lt.s32.totalorder %s4620_s7, %s4620_s7 }
  0x3a   :  { %p4627_p9 = por %p4626_p8, %p4625_p7 }
  0x3c   :  { %p4628_p10 = pnand %p4627_p9, %p4621_p6 }
  0x3e   :  { %4631 = shalt.err (!%p4628_p10)
}
  0x3f   :  { %s4793_s26 = smov 128   ;;  %s4794_s28 = smov 8  }
  0x40   :  { %150 = dma.hbm_to_vmem [thread:$0]  %s5722_s13, 4096, %s145_s5, [#allocation18], %s4793_s26, %s4793_s26, %s4794_s28  }
  0x41   :  { %s4795_s20 = smov [#allocation2]   ;;  %s4796_s11 = smov [#allocation7]  }
  0x42   :  { %s41_s30 = sshll.u32 %s4795_s20, 4  ;;  %s63_s22 = sshll.u32 %s4796_s11, 4  ;;  %s42_s30 = int_to_ptr.vmem [resolvable:$true] %s41_s30  ;;  %s64_s22 = int_to_ptr.vmem [resolvable:$true] %s63_s22 }
  0x43   :  { %s4640_s2 = scalar_lea.vmem %s42_s30, 32  ;;  %p4645_p12 = scmp.lt.s32.totalorder %s42_s30, %s42_s30 }
  0x44   :  { %p4641_p11 = scmp.ne.s32.totalorder %s42_s30, %s4640_s2  ;;  %p4646_p13 = scmp.lt.s32.totalorder %s4640_s2, %s4640_s2 }
  0x46   :  { %p4647_p0 = por %p4646_p13, %p4645_p12 }
  0x48   :  { %p4648_p1 = pnand %p4647_p0, %p4641_p11 }
  0x4a   :  { %4651 = shalt.err (!%p4648_p1)
}
  0x4b   :  { %s5736_s25 = sld [smem:[#allocation30_spill]]  ;;  %s4660_s3 = scalar_lea.vmem %s64_s22, 16 }
  0x4c   :  { %p4661_p2 = scmp.ne.s32.totalorder %s64_s22, %s4660_s3  ;;  %s4664_s13 = scalar_lea.vmem %s64_s22, 32 }
  0x4d   :  { %p4665_p3 = scmp.lt.s32.totalorder %s64_s22, %s64_s22  ;;  %p4666_p4 = scmp.lt.s32.totalorder %s4664_s13, %s4660_s3 }
  0x4f   :  { %p4667_p5 = por %p4666_p4, %p4665_p3 }
  0x51   :  { %44 = dma.hbm_to_vmem [thread:$0]  %s5736_s25, 32, %s42_s30, [#allocation3]  }
  0x52   :  { %p4668_p6 = pnand %p4667_p5, %p4661_p2 }
  0x54   :  { %4671 = shalt.err (!%p4668_p6)
}
  0x55   :  { %66 = dma.hbm_to_vmem [thread:$0]  %s5713_s4, 16, %s64_s22, [#allocation6]  }
  0x56   :  { %s4797_s7 = smov [#allocation10]   ;;  %s4798_s0 = smov [#allocation13]  }
  0x57   :  { %s83_s29 = sshll.u32 %s4797_s7, 4  ;;  %s104_s20 = sshll.u32 %s4798_s0, 4  ;;  %s84_s29 = int_to_ptr.vmem [resolvable:$true] %s83_s29  ;;  %s105_s20 = int_to_ptr.vmem [resolvable:$true] %s104_s20 }
  0x58   :  { %s4680_s11 = scalar_lea.vmem %s84_s29, 16  ;;  %s4684_s30 = scalar_lea.vmem %s84_s29, 32 }
  0x59   :  { %p4681_p7 = scmp.ne.s32.totalorder %s84_s29, %s4680_s11  ;;  %p4685_p8 = scmp.lt.s32.totalorder %s84_s29, %s84_s29 }
  0x5a   :  { %p4686_p9 = scmp.lt.s32.totalorder %s4684_s30, %s4680_s11 }
  0x5c   :  { %p4687_p10 = por %p4686_p9, %p4685_p8 }
  0x5e   :  { %p4688_p11 = pnand %p4687_p10, %p4681_p7 }
  0x60   :  { %4691 = shalt.err (!%p4688_p11)
}
  0x61   :  { %86 = dma.hbm_to_vmem [thread:$0]  %s5715_s6, 16, %s84_s29, [#allocation9]  }
  0x62   :  { %s4700_s24 = scalar_lea.vmem %s105_s20, 32  ;;  %p4705_p13 = scmp.lt.s32.totalorder %s105_s20, %s105_s20 }
  0x63   :  { %p4701_p12 = scmp.ne.s32.totalorder %s105_s20, %s4700_s24  ;;  %p4706_p0 = scmp.lt.s32.totalorder %s4700_s24, %s4700_s24 }
  0x65   :  { %p4707_p1 = por %p4706_p0, %p4705_p13 }
  0x67   :  { %p4708_p2 = pnand %p4707_p1, %p4701_p12 }
  0x69   :  { %4711 = shalt.err (!%p4708_p2)
}
  0x6a   :  { %110 = dma.hbm_to_vmem [thread:$0]  %s5717_s8, 32, %s105_s20, [#allocation12], %s4787_s21, %s4787_s21, %s4788_s1  }
  0x6b   :  { %s4799_s25 = smov [#allocation16]   ;;  %s4800_s13 = smov [#allocation19]  }
  0x6c   :  { %s132_s3 = sshll.u32 %s4799_s25, 4  ;;  %s158_s6 = sshll.u32 %s4800_s13, 4  ;;  %s133_s3 = int_to_ptr.vmem [resolvable:$true] %s132_s3  ;;  %s159_s6 = int_to_ptr.vmem [resolvable:$true] %s158_s6 }
  0x6d   :  { %s4720_s5 = scalar_lea.vmem %s133_s3, 32  ;;  %p4725_p4 = scmp.lt.s32.totalorder %s133_s3, %s133_s3 }
  0x6e   :  { %p4721_p3 = scmp.ne.s32.totalorder %s133_s3, %s4720_s5  ;;  %p4726_p5 = scmp.lt.s32.totalorder %s4720_s5, %s4720_s5 }
  0x70   :  { %p4727_p6 = por %p4726_p5, %p4725_p4 }
  0x72   :  { %p4728_p7 = pnand %p4727_p6, %p4721_p3 }
  0x74   :  { %4731 = shalt.err (!%p4728_p7)
}
  0x75   :  { %138 = dma.hbm_to_vmem [thread:$0]  %s5721_s12, 32, %s133_s3, [#allocation15], %s4787_s21, %s4787_s21, %s4788_s1  }
  0x76   :  { %s4740_s8 = scalar_lea.vmem %s159_s6, 4096  ;;  %p4745_p9 = scmp.lt.s32.totalorder %s159_s6, %s159_s6 }
  0x77   :  { %p4741_p8 = scmp.ne.s32.totalorder %s159_s6, %s4740_s8  ;;  %p4746_p10 = scmp.lt.s32.totalorder %s4740_s8, %s4740_s8 }
  0x79   :  { %p4747_p11 = por %p4746_p10, %p4745_p9 }
  0x7b   :  { %p4748_p12 = pnand %p4747_p11, %p4741_p8 }
  0x7d   :  { %4751 = shalt.err (!%p4748_p12)
}
  0x7e   :  { %164 = dma.hbm_to_vmem [thread:$0]  %s5724_s15, 4096, %s159_s6, [#allocation18], %s4793_s26, %s4793_s26, %s4794_s28  }
  0x7f   :  { %4772 = dma.done.wait [#allocation3], 32  }
  0x80   :  { %4773 = vsyncadd [#allocation3], 4294967264 }
  0x81   :  { %4774 = dma.done.wait [#allocation6], 48  }
  0x82   :  { %4775 = vsyncadd [#allocation6], 4294967248 }
  0x83   :  { %4776 = dma.done.wait [#allocation9], 32  }
  0x84   :  { %4777 = vsyncadd [#allocation9], 4294967264 }
  0x85   :  { %4778 = dma.done.wait [#allocation12], 64  }
  0x86   :  { %4779 = vsyncadd [#allocation12], 4294967232 }
  0x87   :  { %4780 = dma.done.wait [#allocation15], 64  }
  0x88   :  { %4781 = vsyncadd [#allocation15], 4294967232 }
  0x89   :  { %4782 = dma.done.wait [#allocation18], 8192  }
  0x8a   :  { %4783 = vsyncadd [#allocation18], 4294959104  ;;  %s5737_s1 = sld [smem:[#allocation29_spill]]  ;;  %v3439_v63 = vld [vmem:[#allocation7] ss:$0 sm:$0xff]  ;;  %vm399_vm0 = vcmask 1041408  }
  0x8b   :  { %s5738_s22 = sld [smem:[#allocation28_spill]]  ;;  %vm386_vm1 = vcmask 15360   ;;  %vm709_vm2 = vcmask 130048   ;;  %vm4802_vm3 = vmmov 0  }
  0x90   :  { %v4961_v0 = vld [vmem:[%s5737_s1 + $0x78] sm:$0xff]  ;;  %v4966_v1 = vld [vmem:[%s5737_s1 + $0x70] sm:$0xff]  ;;  %v4973_v2 = vld [vmem:[%s5737_s1 + $0x68] sm:$0xff] }
  0x91   :  { %3854 = vmatprep.subr.mxu0 %v4961_v0  ;;  %v4980_v3 = vld [vmem:[%s5737_s1 + $0x60] sm:$0xff]  ;;  %v205_v5 = vld [vmem:[%s5738_s22 + $0x8] sm:$0xff]  ;;  %v4993_v6 = vld [vmem:[%s5737_s1 + $0x58] sm:$0xff] }
  0x92   :  { %3855 = vmatpush3.msra.mxu0 %v4961_v0  ;;  %v204_v4 = vld [vmem:[%s5738_s22] sm:$0xff]  ;;  %v206_v8 = vld [vmem:[%s5738_s22 + $0x10] sm:$0xff]  ;;  %v207_v9 = vld [vmem:[%s5738_s22 + $0x18] sm:$0xff] }
  0x93   :  { %3856 = vmatprep.subr.mxu0 %v4966_v1  ;;  %v228_v7 = vadd.f32 %v205_v5, %v204_v4  ;;  %v5006_v10 = vld [vmem:[%s5737_s1 + $0x50] sm:$0xff]  ;;  %v270_v12 = vadd.f32 %v207_v9, %v206_v8  ;;  %v5013_v13 = vld [vmem:[%s5737_s1 + $0x48] sm:$0xff]  ;;  %v5020_v16 = vld [vmem:[%s5737_s1 + $0x40] sm:$0xff] }
  0x94   :  { %3857 = vmatpush3.msra.mxu0 %v4966_v1  ;;  %v5027_v19 = vld [vmem:[%s5737_s1 + $0x38] sm:$0xff]  ;;  %v5034_v22 = vld [vmem:[%s5737_s1 + $0x30] sm:$0xff]  ;;  %v5041_v25 = vld [vmem:[%s5737_s1 + $0x28] sm:$0xff] }
  0x95   :  { %3858 = vmatprep.subr.mxu0 %v4973_v2  ;;  %v229_v11 = vrot.slane %v228_v7, 4  ;;  %v271_v15 = vrot.slane %v270_v12, 4  ;;  %v5048_v28 = vld [vmem:[%s5737_s1 + $0x20] sm:$0xff]  ;;  %v5057_v31 = vld [vmem:[%s5737_s1 + $0x18] sm:$0xff]  ;;  %v5068_v35 = vld [vmem:[%s5737_s1 + $0x10] sm:$0xff] }
  0x96   :  { %3859 = vmatpush3.msra.mxu0 %v4973_v2  ;;  %v5077_v40 = vld [vmem:[%s5737_s1 + $0x8] sm:$0xff]  ;;  %v5084_v44 = vld [vmem:[%s5737_s1] sm:$0xff] }
  0x97   :  { %3860 = vmatprep.subr.mxu0 %v4980_v3  ;;  %v230_v14 = vadd.f32 %v229_v11, %v228_v7  ;;  %v272_v18 = vadd.f32 %v271_v15, %v270_v12 }
  0x98   :  { %3861 = vmatpush3.msra.mxu0 %v4980_v3 }
  0x99   :  { %3862 = vmatprep.subr.mxu0 %v4993_v6  ;;  %v231_v17 = vrot.slane %v230_v14, 2  ;;  %v273_v21 = vrot.slane %v272_v18, 2 }
  0x9a   :  { %3863 = vmatpush3.msra.mxu0 %v4993_v6 }
  0x9b   :  { %3864 = vmatprep.subr.mxu0 %v5006_v10  ;;  %v232_v20 = vadd.f32 %v231_v17, %v230_v14  ;;  %v274_v24 = vadd.f32 %v273_v21, %v272_v18 }
  0x9c   :  { %3865 = vmatpush3.msra.mxu0 %v5006_v10 }
  0x9d   :  { %3866 = vmatprep.subr.mxu0 %v5013_v13  ;;  %v233_v23 = vrot.slane %v232_v20, 1  ;;  %v275_v27 = vrot.slane %v274_v24, 1 }
  0x9e   :  { %3867 = vmatpush3.msra.mxu0 %v5013_v13 }
  0x9f   :  { %3868 = vmatprep.subr.mxu0 %v5020_v16  ;;  %v234_v26 = vadd.f32 %v233_v23, %v232_v20  ;;  %v276_v30 = vadd.f32 %v275_v27, %v274_v24  ;;  %v5116_v24 = vld [vmem:[#allocation2] sm:$0x3] }
  0xa0   :  { %3869 = vmatpush3.msra.mxu0 %v5020_v16  ;;  %3892 = vmatprep.subr.msk.mxu1 %vm399_vm0, %v5116_v24 }
  0xa1   :  { %3870 = vmatprep.subr.mxu0 %v5027_v19  ;;  %v5050_v29 = vmul.f32 0.0625, %v234_v26  ;;  %v5061_v34 = vmul.f32 0.0625, %v276_v30  ;;  %3893 = vmatpush3.msk.msra.mxu1 %vm399_vm0, %v5116_v24 }
  0xa2   :  { %3871 = vmatpush3.msra.mxu0 %v5027_v19  ;;  %3900 = vmatprep.subr.mxu1 %v4961_v0 }
  0xa3   :  { %3872 = vmatprep.subr.mxu0 %v5034_v22  ;;  %v237_v32 = vsub.f32 %v204_v4, %v5050_v29  ;;  %v238_v33 = vsub.f32 %v205_v5, %v5050_v29  ;;  %v278_v38 = vsub.f32 %v206_v8, %v5061_v34  ;;  %v279_v39 = vsub.f32 %v207_v9, %v5061_v34  ;;  %v3440_v8 = vld [vmem:[#allocation8] ss:$0 sm:$0xff] }
  0xa4   :  { %3873 = vmatpush3.msra.mxu0 %v5034_v22 }
  0xa5   :  { %3874 = vmatprep.subr.mxu0 %v5041_v25  ;;  %v239_v36 = vmul.f32 %v237_v32, %v237_v32  ;;  %v240_v37 = vmul.f32 %v238_v33, %v238_v33  ;;  %v280_v42 = vmul.f32 %v278_v38, %v278_v38  ;;  %v281_v43 = vmul.f32 %v279_v39, %v279_v39 }
  0xa6   :  { %3875 = vmatpush3.msra.mxu0 %v5041_v25 }
  0xa7   :  { %3876 = vmatprep.subr.mxu0 %v5048_v28  ;;  %v241_v41 = vadd.f32 %v240_v37, %v239_v36  ;;  %v282_v46 = vadd.f32 %v281_v43, %v280_v42 }
  0xa8   :  { %3877 = vmatpush3.msra.mxu0 %v5048_v28 }
  0xa9   :  { %3878 = vmatprep.subr.mxu0 %v5057_v31  ;;  %v242_v45 = vrot.slane %v241_v41, 4  ;;  %v283_v48 = vrot.slane %v282_v46, 4 }
  0xaa   :  { %3879 = vmatpush3.msra.mxu0 %v5057_v31 }
  0xab   :  { %3880 = vmatprep.subr.mxu0 %v5068_v35  ;;  %v243_v47 = vadd.f32 %v242_v45, %v241_v41  ;;  %v284_v50 = vadd.f32 %v283_v48, %v282_v46 }
  0xac   :  { %3881 = vmatpush3.msra.mxu0 %v5068_v35 }
  0xad   :  { %3882 = vmatprep.subr.mxu0 %v5077_v40  ;;  %v244_v49 = vrot.slane %v243_v47, 2  ;;  %v285_v52 = vrot.slane %v284_v50, 2 }
  0xae   :  { %3883 = vmatpush3.msra.mxu0 %v5077_v40 }
  0xaf   :  { %3884 = vmatprep.subr.mxu0 %v5084_v44  ;;  %v245_v51 = vadd.f32 %v244_v49, %v243_v47  ;;  %v286_v54 = vadd.f32 %v285_v52, %v284_v50 }
  0xb0   :  { %3885 = vmatpush3.msra.mxu0 %v5084_v44 }
  0xb1   :  { %v246_v53 = vrot.slane %v245_v51, 1  ;;  %v287_v56 = vrot.slane %v286_v54, 1  ;;  %3938 = vmatprep.subr.msk.mxu0 %vm399_vm0, %v5116_v24 }
  0xb3   :  { %v247_v55 = vadd.f32 %v246_v53, %v245_v51  ;;  %v288_v58 = vadd.f32 %v287_v56, %v286_v54  ;;  %v707_v53 = vld [vmem:[%s5718_s9] sm:$0xff] }
  0xb5   :  { %v248_v57 = vmul.f32 0.0625, %v247_v55  ;;  %v289_v60 = vmul.f32 0.0625, %v288_v58 }
  0xb7   :  { %v5090_v59 = vadd.f32 1e-05, %v248_v57  ;;  %v5093_v61 = vadd.f32 1e-05, %v289_v60 }
  0xb9   :  { %4476 = vrsqrt.f32 %v5090_v59 }
  0xba   :  { %4478 = vrsqrt.f32 %v5093_v61 }
  0xc6   :  { %v5096_v62 = vpop.eup %4476 }
  0xc7   :  { %v251_v4 = vmul.f32 %v5096_v62, %v237_v32  ;;  %v252_v5 = vmul.f32 %v5096_v62, %v238_v33  ;;  %v5100_v7 = vpop.eup %4478 }
  0xc8   :  { %v292_v12 = vmul.f32 %v5100_v7, %v278_v38  ;;  %v293_v14 = vmul.f32 %v5100_v7, %v279_v39 }
  0xc9   :  { %v259_v9 = vmul.f32 %v3439_v63, %v251_v4  ;;  %v260_v11 = vmul.f32 %v3439_v63, %v252_v5 }
  0xca   :  { %v294_v18 = vmul.f32 %v3439_v63, %v292_v12  ;;  %v295_v20 = vmul.f32 %v3439_v63, %v293_v14  ;;  %v3452_v12 = vld [vmem:[#allocation13] ss:$0 sm:$0xff] }
  0xcb   :  { %v5104_v15 = vadd.f32 %v3440_v8, %v259_v9  ;;  %v5106_v17 = vadd.f32 %v3440_v8, %v260_v11 }
  0xcc   :  { %v5109_v21 = vadd.f32 %v3440_v8, %v294_v18  ;;  %v5112_v23 = vadd.f32 %v3440_v8, %v295_v20  ;;  %v3451_v8 = vld [vmem:[#allocation11] ss:$0 sm:$0xff] }
  0xcd   :  { %3886 = vmatprep.mubr.f32.mxu0 %v5104_v15 }
  0xce   :  { %3887 = vmatmul.mubr.f32.vlgmr.msra.gmra.mxu0 %v5106_v17 }
  0xcf   :  { %3889 = vmatprep.mubr.f32.mxu0 %v5109_v21  ;;  %3939 = vmatpush3.msk.msra.mxu0 %vm399_vm0, %v5116_v24 }
  0xd2   :  { %3890 = vmatmul.mubr.f32.gmra.mxu0 %v5112_v23 }
 0x18e   :  { %v3888_v26 = vpop.f32.mrf.mxu0 }
 0x190   :  { %v367_v27 = vpop.f32.mrf.mxu0 }
 0x191   :  { %3894 = vmatprep.mubr.msk.f32.mxu1 %vm386_vm1, %v367_v27 }
 0x192   :  { %v3891_v30 = vpop.f32.mrf.mxu0  ;;  %3895 = vmatmul.mubr.msk.f32.vlgmr.msra.gmra.mxu1 %vm386_vm1, %v3888_v26 }
 0x193   :  { %3901 = vmatpush3.msra.mxu1 %v4961_v0 }
 0x194   :  { %v377_v32 = vpop.f32.mrf.mxu0  ;;  %3902 = vmatprep.subr.mxu1 %v4966_v1 }
 0x195   :  { %3897 = vmatprep.mubr.msk.f32.mxu1 %vm386_vm1, %v377_v32  ;;  %3903 = vmatpush3.msra.mxu1 %v4966_v1 }
 0x196   :  { %3898 = vmatmul.mubr.msk.f32.gmra.mxu1 %vm386_vm1, %v3891_v30  ;;  %3904 = vmatprep.subr.mxu1 %v4973_v2 }
 0x197   :  { %3905 = vmatpush3.msra.mxu1 %v4973_v2 }
 0x198   :  { %3906 = vmatprep.subr.mxu1 %v4980_v3 }
 0x199   :  { %3907 = vmatpush3.msra.mxu1 %v4980_v3 }
 0x19a   :  { %3908 = vmatprep.subr.mxu1 %v4993_v6 }
 0x19b   :  { %3909 = vmatpush3.msra.mxu1 %v4993_v6 }
 0x19c   :  { %3910 = vmatprep.subr.mxu1 %v5006_v10 }
 0x19d   :  { %3911 = vmatpush3.msra.mxu1 %v5006_v10 }
 0x19e   :  { %3912 = vmatprep.subr.mxu1 %v5013_v13 }
 0x19f   :  { %3913 = vmatpush3.msra.mxu1 %v5013_v13 }
 0x1a0   :  { %3914 = vmatprep.subr.mxu1 %v5020_v16 }
 0x1a1   :  { %3915 = vmatpush3.msra.mxu1 %v5020_v16 }
 0x1a2   :  { %3916 = vmatprep.subr.mxu1 %v5027_v19 }
 0x1a3   :  { %3917 = vmatpush3.msra.mxu1 %v5027_v19 }
 0x1a4   :  { %3918 = vmatprep.subr.mxu1 %v5034_v22 }
 0x1a5   :  { %3919 = vmatpush3.msra.mxu1 %v5034_v22 }
 0x1a6   :  { %3920 = vmatprep.subr.mxu1 %v5041_v25 }
 0x1a7   :  { %3921 = vmatpush3.msra.mxu1 %v5041_v25 }
 0x1a8   :  { %3922 = vmatprep.subr.mxu1 %v5048_v28 }
 0x1a9   :  { %3923 = vmatpush3.msra.mxu1 %v5048_v28 }
 0x1aa   :  { %3924 = vmatprep.subr.mxu1 %v5057_v31 }
 0x1ab   :  { %3925 = vmatpush3.msra.mxu1 %v5057_v31 }
 0x1ac   :  { %3926 = vmatprep.subr.mxu1 %v5068_v35 }
 0x1ad   :  { %3927 = vmatpush3.msra.mxu1 %v5068_v35 }
 0x1ae   :  { %3928 = vmatprep.subr.mxu1 %v5077_v40 }
 0x1af   :  { %3929 = vmatpush3.msra.mxu1 %v5077_v40 }
 0x1b0   :  { %3930 = vmatprep.subr.mxu1 %v5084_v44 }
 0x1b1   :  { %3931 = vmatpush3.msra.mxu1 %v5084_v44 }
 0x252   :  { %v3896_v33 = vpop.f32.mrf.mxu1 }
 0x253   :  { %v489_v36 = vsub.f32 %v5106_v17, %v3896_v33 }
 0x254   :  { %v469_v37 = vpop.f32.mrf.mxu1 }
 0x255   :  { %v488_v38 = vsub.f32 %v5104_v15, %v469_v37  ;;  %v493_v42 = vmul.f32 %v489_v36, %v489_v36 }
 0x256   :  { %v3899_v39 = vpop.f32.mrf.mxu1 }
 0x257   :  { %v492_v41 = vmul.f32 %v488_v38, %v488_v38  ;;  %v491_v43 = vsub.f32 %v5112_v23, %v3899_v39 }
 0x258   :  { %v479_v45 = vpop.f32.mrf.mxu1 }
 0x259   :  { %v490_v46 = vsub.f32 %v5109_v21, %v479_v45  ;;  %3932 = vmatprep.mubr.f32.mxu1 %v492_v41  ;;  %v495_v48 = vmul.f32 %v491_v43, %v491_v43  ;;  %v708_v41 = vld [vmem:[%s5718_s9 + $0x8] sm:$0xff]  ;;  %v3457_v45 = vld [vmem:[%s5718_s9 + $0x18] sm:$0xff] }
 0x25a   :  { %3933 = vmatmul.mubr.f32.vlgmr.msra.gmra.mxu1 %v493_v42 }
 0x25b   :  { %v494_v47 = vmul.f32 %v490_v46, %v490_v46 }
 0x25d   :  { %3935 = vmatprep.mubr.f32.mxu1 %v494_v47 }
 0x25e   :  { %3936 = vmatmul.mubr.f32.gmra.mxu1 %v495_v48  ;;  %v5229_v48 = vld [vmem:[#allocation5] ss:$0 sm:$0xff] }
 0x25f   :  { %3950 = vmatprep.mubr.msk.f32.mxu1 %vm709_vm2, %v707_v53 }
 0x31a   :  { %v3934_v49 = vpop.f32.mrf.mxu1 }
 0x31c   :  { %v562_v50 = vpop.f32.mrf.mxu1 }
 0x31d   :  { %3940 = vmatprep.mubr.msk.f32.mxu0 %vm386_vm1, %v562_v50 }
 0x31e   :  { %v3937_v51 = vpop.f32.mrf.mxu1  ;;  %3941 = vmatmul.mubr.msk.f32.vlgmr.msra.gmra.mxu0 %vm386_vm1, %v3934_v49  ;;  %v5231_v49 = vld [vmem:[#allocation5 + $0x1] ss:$0 sm:$0xff] }
 0x320   :  { %v572_v52 = vpop.f32.mrf.mxu1 }
 0x321   :  { %3943 = vmatprep.mubr.msk.f32.mxu0 %vm386_vm1, %v572_v52 }
 0x322   :  { %3944 = vmatmul.mubr.msk.f32.gmra.mxu0 %vm386_vm1, %v3937_v51 }
 0x323   :  { %3964 = vmatprep.mubr.msk.f32.mxu0 %vm709_vm2, %v707_v53  ;;  %v896_v53 = vld [vmem:[%s5719_s10 + $0x8] sm:$0xff] }
 0x3de   :  { %v3942_v54 = vpop.f32.mrf.mxu0 }
 0x3df   :  { %v665_v55 = vadd.f32 1e-05, %v3942_v54 }
 0x3e0   :  { %v659_v56 = vpop.f32.mrf.mxu0 }
 0x3e1   :  { %4480 = vrsqrt.f32 %v665_v55  ;;  %v660_v57 = vadd.f32 1e-05, %v659_v56 }
 0x3e2   :  { %v3945_v58 = vpop.f32.mrf.mxu0 }
 0x3e3   :  { %4482 = vrsqrt.f32 %v660_v57  ;;  %v675_v60 = vadd.f32 1e-05, %v3945_v58 }
 0x3e4   :  { %v669_v63 = vpop.f32.mrf.mxu0 }
 0x3e5   :  { %4484 = vrsqrt.f32 %v675_v60  ;;  %v670_v4 = vadd.f32 1e-05, %v669_v63  ;;  %v895_v63 = vld [vmem:[%s5719_s10] sm:$0xff] }
 0x3e7   :  { %4486 = vrsqrt.f32 %v670_v4 }
 0x3ee   :  { %v4481_v5 = vpop.eup %4480 }
 0x3ef   :  { %v683_v9 = vmul.f32 %v4481_v5, %v489_v36 }
 0x3f0   :  { %v4483_v11 = vpop.eup %4482 }
 0x3f1   :  { %v693_v14 = vmul.f32 %v3451_v8, %v683_v9  ;;  %v682_v18 = vmul.f32 %v4483_v11, %v488_v38 }
 0x3f2   :  { %v4485_v20 = vpop.eup %4484 }
 0x3f3   :  { %v703_v26 = vadd.f32 %v3452_v12, %v693_v14  ;;  %v692_v27 = vmul.f32 %v3451_v8, %v682_v18  ;;  %v685_v30 = vmul.f32 %v4485_v20, %v491_v43  ;;  %v3456_v43 = vld [vmem:[%s5718_s9 + $0x10] sm:$0xff] }
 0x3f4   :  { %v4487_v32 = vpop.eup %4486 }
 0x3f5   :  { %3946 = vmatprep.subr.mxu1 %v703_v26  ;;  %v702_v33 = vadd.f32 %v3452_v12, %v692_v27  ;;  %v695_v37 = vmul.f32 %v3451_v8, %v685_v30  ;;  %v684_v39 = vmul.f32 %v4487_v32, %v490_v46 }
 0x3f6   :  { %3947 = vmatpush3.msra.mxu1 %v703_v26 }
 0x3f7   :  { %3948 = vmatprep.subr.mxu1 %v702_v33  ;;  %v705_v36 = vadd.f32 %v3452_v12, %v695_v37  ;;  %v694_v42 = vmul.f32 %v3451_v8, %v684_v39 }
 0x3f8   :  { %3949 = vmatpush3.msra.mxu1 %v702_v33 }
 0x3f9   :  { %3951 = vmatmul.mubr.msk.f32.vlgmr.msra.gmra.mxu1 %vm709_vm2, %v708_v41  ;;  %3953 = vmatprep.subr.mxu1 %v703_v26  ;;  %v704_v38 = vadd.f32 %v3452_v12, %v694_v42 }
 0x3fa   :  { %3960 = vmatprep.subr.mxu0 %v705_v36  ;;  %3954 = vmatpush3.msra.mxu1 %v703_v26 }
 0x3fb   :  { %3961 = vmatpush3.msra.mxu0 %v705_v36  ;;  %3955 = vmatprep.subr.mxu1 %v702_v33 }
 0x3fc   :  { %3962 = vmatprep.subr.mxu0 %v704_v38  ;;  %3956 = vmatpush3.msra.mxu1 %v702_v33 }
 0x3fd   :  { %3957 = vmatprep.mubr.msk.f32.mxu1 %vm709_vm2, %v3456_v43  ;;  %3963 = vmatpush3.msra.mxu0 %v704_v38 }
 0x3fe   :  { %3958 = vmatmul.mubr.msk.f32.vlgmr.msra.gmra.mxu1 %vm709_vm2, %v3457_v45  ;;  %3967 = vmatprep.subr.mxu1 %v705_v36 }
 0x3ff   :  { %3968 = vmatpush3.msra.mxu1 %v705_v36  ;;  %3971 = vmatprep.mubr.msk.f32.mxu1 %vm709_vm2, %v3456_v43 }
 0x400   :  { %3969 = vmatprep.subr.mxu1 %v704_v38  ;;  %3965 = vmatmul.mubr.msk.f32.vlgmr.msra.gmra.mxu0 %vm709_vm2, %v708_v41 }
 0x401   :  { %3970 = vmatpush3.msra.mxu1 %v704_v38  ;;  %3974 = vmatprep.subr.mxu0 %v4961_v0 }
 0x402   :  { %3972 = vmatmul.mubr.msk.f32.vlgmr.msra.gmra.mxu1 %vm709_vm2, %v3457_v45  ;;  %3975 = vmatpush3.msra.mxu0 %v4961_v0 }
 0x403   :  { %3976 = vmatprep.subr.mxu0 %v4966_v1  ;;  %4012 = vmatprep.subr.msk.mxu1 %vm399_vm0, %v5116_v24 }
 0x404   :  { %3977 = vmatpush3.msra.mxu0 %v4966_v1  ;;  %4013 = vmatpush3.msk.msra.mxu1 %vm399_vm0, %v5116_v24 }
 0x405   :  { %3978 = vmatprep.subr.mxu0 %v4973_v2  ;;  %4020 = vmatprep.subr.mxu1 %v4961_v0 }
 0x406   :  { %3979 = vmatpush3.msra.mxu0 %v4973_v2 }
 0x407   :  { %3980 = vmatprep.subr.mxu0 %v4980_v3 }
 0x408   :  { %3981 = vmatpush3.msra.mxu0 %v4980_v3 }
 0x409   :  { %3982 = vmatprep.subr.mxu0 %v4993_v6 }
 0x40a   :  { %3983 = vmatpush3.msra.mxu0 %v4993_v6 }
 0x40b   :  { %3984 = vmatprep.subr.mxu0 %v5006_v10 }
 0x40c   :  { %3985 = vmatpush3.msra.mxu0 %v5006_v10 }
 0x40d   :  { %3986 = vmatprep.subr.mxu0 %v5013_v13 }
 0x40e   :  { %3987 = vmatpush3.msra.mxu0 %v5013_v13 }
 0x40f   :  { %3988 = vmatprep.subr.mxu0 %v5020_v16 }
 0x410   :  { %3989 = vmatpush3.msra.mxu0 %v5020_v16 }
 0x411   :  { %3990 = vmatprep.subr.mxu0 %v5027_v19 }
 0x412   :  { %3991 = vmatpush3.msra.mxu0 %v5027_v19 }
 0x413   :  { %3992 = vmatprep.subr.mxu0 %v5034_v22 }
 0x414   :  { %3993 = vmatpush3.msra.mxu0 %v5034_v22 }
 0x415   :  { %3994 = vmatprep.subr.mxu0 %v5041_v25 }
 0x416   :  { %3995 = vmatpush3.msra.mxu0 %v5041_v25 }
 0x417   :  { %3996 = vmatprep.subr.mxu0 %v5048_v28 }
 0x418   :  { %3997 = vmatpush3.msra.mxu0 %v5048_v28 }
 0x419   :  { %3998 = vmatprep.subr.mxu0 %v5057_v31 }
 0x41a   :  { %3999 = vmatpush3.msra.mxu0 %v5057_v31 }
 0x41b   :  { %4000 = vmatprep.subr.mxu0 %v5068_v35 }
 0x41c   :  { %4001 = vmatpush3.msra.mxu0 %v5068_v35 }
 0x41d   :  { %4002 = vmatprep.subr.mxu0 %v5077_v40 }
 0x41e   :  { %4003 = vmatpush3.msra.mxu0 %v5077_v40 }
 0x41f   :  { %4004 = vmatprep.subr.mxu0 %v5084_v44 }
 0x420   :  { %4005 = vmatpush3.msra.mxu0 %v5084_v44 }
 0x421   :  { %4058 = vmatprep.subr.msk.mxu0 %vm399_vm0, %v5116_v24 }
 0x4b9   :  { %v3952_v46 = vpop.f32.mrf.mxu1 }
 0x4ba   :  { %v798_v51 = vmul.f32 %v3952_v46, %v5229_v48 }
 0x4bb   :  { %v782_v47 = vpop.f32.mrf.mxu1 }
 0x4bc   :  { %v797_v56 = vmul.f32 %v5229_v48, %v782_v47 }
 0x4be   :  { %v3959_v50 = vpop.f32.mrf.mxu1 }
 0x4bf   :  { %v892_v52 = vmul.f32 %v3959_v50, %v5231_v49 }
 0x4c0   :  { %v876_v54 = vpop.f32.mrf.mxu1  ;;  %v3966_v55 = vpop.f32.mrf.mxu0 }
 0x4c1   :  { %v894_v57 = vadd.f32 %v892_v52, %v798_v51  ;;  %v891_v58 = vmul.f32 %v5231_v49, %v876_v54  ;;  %v977_v60 = vmul.f32 %v3966_v55, %v5229_v48 }
 0x4c2   :  { %v3973_v4 = vpop.f32.mrf.mxu1  ;;  %v967_v5 = vpop.f32.mrf.mxu0 }
 0x4c3   :  { %v898_v8 = vadd.f32 %v896_v53, %v894_v57  ;;  %v893_v9 = vadd.f32 %v891_v58, %v797_v56  ;;  %v1054_v11 = vmul.f32 %v3973_v4, %v5231_v49  ;;  %v976_v20 = vmul.f32 %v5229_v48, %v967_v5  ;;  %v1480_v4 = vld [vmem:[#allocation17 + $0x68] sm:$0xff] }
 0x4c4   :  { %v1044_v12 = vpop.f32.mrf.mxu1 }
 0x4c5   :  { %v897_v14 = vadd.f32 %v895_v63, %v893_v9  ;;  %v1056_v18 = vadd.f32 %v1054_v11, %v977_v60  ;;  %v1053_v26 = vmul.f32 %v5231_v49, %v1044_v12  ;;  %v900_v27 = vmax.f32 %v898_v8, 0.0  ;;  %v1482_v60 = vld [vmem:[#allocation17 + $0x78] sm:$0xff]  ;;  %v1479_v12 = vld [vmem:[#allocation17 + $0x60] sm:$0xff] }
 0x4c7   :  { %v899_v30 = vmax.f32 %v897_v14, 0.0  ;;  %v1058_v32 = vadd.f32 %v1056_v18, %v896_v53  ;;  %v1055_v33 = vadd.f32 %v1053_v26, %v976_v20  ;;  %v5251_v41 = vadd.f32 %v900_v27, %v5106_v17  ;;  %v1478_v14 = vld [vmem:[#allocation17 + $0x58] sm:$0xff]  ;;  %v1477_v18 = vld [vmem:[#allocation17 + $0x50] sm:$0xff]  ;;  %v1476_v20 = vld [vmem:[#allocation17 + $0x48] sm:$0xff] }
 0x4c8   :  { %v1475_v26 = vld [vmem:[#allocation17 + $0x40] sm:$0xff]  ;;  %v1474_v27 = vld [vmem:[#allocation17 + $0x38] sm:$0xff] }
 0x4c9   :  { %v1057_v37 = vadd.f32 %v1055_v33, %v895_v63  ;;  %v5248_v39 = vadd.f32 %v899_v30, %v5104_v15  ;;  %v1060_v36 = vmax.f32 %v1058_v32, 0.0  ;;  %v1481_v63 = vld [vmem:[#allocation17 + $0x70] sm:$0xff]  ;;  %v1472_v32 = vld [vmem:[#allocation17 + $0x28] sm:$0xff]  ;;  %v1471_v33 = vld [vmem:[#allocation17 + $0x20] sm:$0xff] }
 0x4ca   :  { %v1473_v30 = vld [vmem:[#allocation17 + $0x30] sm:$0xff] }
 0x4cb   :  { %v1059_v42 = vmax.f32 %v1057_v37, 0.0  ;;  %4006 = vmatprep.mubr.f32.mxu0 %v5248_v39  ;;  %v5261_v43 = vadd.f32 %v1060_v36, %v5112_v23  ;;  %v1470_v37 = vld [vmem:[#allocation17 + $0x18] sm:$0xff]  ;;  %v1469_v36 = vld [vmem:[#allocation17 + $0x10] sm:$0xff] }
 0x4cc   :  { %4007 = vmatmul.mubr.f32.vlgmr.msra.gmra.mxu0 %v5251_v41 }
 0x4cd   :  { %v5256_v38 = vadd.f32 %v1059_v42, %v5109_v21  ;;  %4059 = vmatpush3.msk.msra.mxu0 %vm399_vm0, %v5116_v24  ;;  %v1468_v42 = vld [vmem:[#allocation17 + $0x8] sm:$0xff] }
 0x4cf   :  { %4009 = vmatprep.mubr.f32.mxu0 %v5256_v38 }
 0x4d0   :  { %4010 = vmatmul.mubr.f32.gmra.mxu0 %v5261_v43 }
 0x58c   :  { %v4008_v15 = vpop.f32.mrf.mxu0 }
 0x58e   :  { %v1133_v17 = vpop.f32.mrf.mxu0 }
 0x58f   :  { %4014 = vmatprep.mubr.msk.f32.mxu1 %vm386_vm1, %v1133_v17  ;;  %v1594_v17 = vld [vmem:[#allocation19 + $0x78] sm:$0xff] }
 0x590   :  { %v4011_v45 = vpop.f32.mrf.mxu0  ;;  %4015 = vmatmul.mubr.msk.f32.vlgmr.msra.gmra.mxu1 %vm386_vm1, %v4008_v15  ;;  %v1467_v15 = vld [vmem:[#allocation17] sm:$0xff]  ;;  %4104 = vmatprep.subr.mxu0 %v1594_v17 }
 0x591   :  { %4021 = vmatpush3.msra.mxu1 %v4961_v0 }
 0x592   :  { %v1143_v21 = vpop.f32.mrf.mxu0  ;;  %4022 = vmatprep.subr.mxu1 %v4966_v1 }
 0x593   :  { %4017 = vmatprep.mubr.msk.f32.mxu1 %vm386_vm1, %v1143_v21  ;;  %4023 = vmatpush3.msra.mxu1 %v4966_v1  ;;  %v1592_v21 = vld [vmem:[#allocation19 + $0x68] sm:$0xff] }
 0x594   :  { %4018 = vmatmul.mubr.msk.f32.gmra.mxu1 %vm386_vm1, %v4011_v45  ;;  %4024 = vmatprep.subr.mxu1 %v4973_v2  ;;  %v1593_v45 = vld [vmem:[#allocation19 + $0x70] sm:$0xff] }
 0x595   :  { %4025 = vmatpush3.msra.mxu1 %v4973_v2 }
 0x596   :  { %4026 = vmatprep.subr.mxu1 %v4980_v3 }
 0x597   :  { %4027 = vmatpush3.msra.mxu1 %v4980_v3 }
 0x598   :  { %4028 = vmatprep.subr.mxu1 %v4993_v6 }
 0x599   :  { %4029 = vmatpush3.msra.mxu1 %v4993_v6 }
 0x59a   :  { %4030 = vmatprep.subr.mxu1 %v5006_v10 }
 0x59b   :  { %4031 = vmatpush3.msra.mxu1 %v5006_v10 }
 0x59c   :  { %4032 = vmatprep.subr.mxu1 %v5013_v13 }
 0x59d   :  { %4033 = vmatpush3.msra.mxu1 %v5013_v13 }
 0x59e   :  { %4034 = vmatprep.subr.mxu1 %v5020_v16 }
 0x59f   :  { %4035 = vmatpush3.msra.mxu1 %v5020_v16 }
 0x5a0   :  { %4036 = vmatprep.subr.mxu1 %v5027_v19 }
 0x5a1   :  { %4037 = vmatpush3.msra.mxu1 %v5027_v19 }
 0x5a2   :  { %4038 = vmatprep.subr.mxu1 %v5034_v22 }
 0x5a3   :  { %4039 = vmatpush3.msra.mxu1 %v5034_v22 }
 0x5a4   :  { %4040 = vmatprep.subr.mxu1 %v5041_v25 }
 0x5a5   :  { %4041 = vmatpush3.msra.mxu1 %v5041_v25 }
 0x5a6   :  { %4042 = vmatprep.subr.mxu1 %v5048_v28 }
 0x5a7   :  { %4043 = vmatpush3.msra.mxu1 %v5048_v28 }
 0x5a8   :  { %4044 = vmatprep.subr.mxu1 %v5057_v31 }
 0x5a9   :  { %4045 = vmatpush3.msra.mxu1 %v5057_v31 }
 0x5aa   :  { %4046 = vmatprep.subr.mxu1 %v5068_v35 }
 0x5ab   :  { %4047 = vmatpush3.msra.mxu1 %v5068_v35 }
 0x5ac   :  { %4048 = vmatprep.subr.mxu1 %v5077_v40 }
 0x5ad   :  { %4049 = vmatpush3.msra.mxu1 %v5077_v40 }
 0x5ae   :  { %4050 = vmatprep.subr.mxu1 %v5084_v44 }
 0x5af   :  { %4051 = vmatpush3.msra.mxu1 %v5084_v44 }
 0x5b0   :  { %4066 = vmatprep.subr.mxu1 %v1482_v60 }
 0x650   :  { %v4016_v23 = vpop.f32.mrf.mxu1 }
 0x651   :  { %v5301_v46 = vsub.f32 %v5251_v41, %v4016_v23  ;;  %v1591_v23 = vld [vmem:[#allocation19 + $0x60] sm:$0xff] }
 0x652   :  { %v1230_v47 = vpop.f32.mrf.mxu1 }
 0x653   :  { %v5304_v50 = vsub.f32 %v5248_v39, %v1230_v47  ;;  %v1254_v53 = vmul.f32 %v5301_v46, %v5301_v46  ;;  %v1590_v47 = vld [vmem:[#allocation19 + $0x58] sm:$0xff] }
 0x654   :  { %v4019_v51 = vpop.f32.mrf.mxu1 }
 0x655   :  { %v1253_v52 = vmul.f32 %v5304_v50, %v5304_v50  ;;  %v5311_v54 = vsub.f32 %v5261_v43, %v4019_v51  ;;  %v1589_v51 = vld [vmem:[#allocation19 + $0x50] sm:$0xff] }
 0x656   :  { %v1240_v55 = vpop.f32.mrf.mxu1 }
 0x657   :  { %v5314_v56 = vsub.f32 %v5256_v38, %v1240_v55  ;;  %4052 = vmatprep.mubr.f32.mxu1 %v1253_v52  ;;  %v1256_v58 = vmul.f32 %v5311_v54, %v5311_v54  ;;  %v1588_v52 = vld [vmem:[#allocation19 + $0x48] sm:$0xff]  ;;  %v1586_v55 = vld [vmem:[#allocation19 + $0x38] sm:$0xff] }
 0x658   :  { %4053 = vmatmul.mubr.f32.vlgmr.msra.gmra.mxu1 %v1254_v53  ;;  %v1587_v53 = vld [vmem:[#allocation19 + $0x40] sm:$0xff] }
 0x659   :  { %v1255_v57 = vmul.f32 %v5314_v56, %v5314_v56  ;;  %4067 = vmatpush3.msra.mxu1 %v1482_v60  ;;  %v1583_v60 = vld [vmem:[#allocation19 + $0x20] sm:$0xff] }
 0x65a   :  { %4068 = vmatprep.subr.mxu1 %v1481_v63 }
 0x65b   :  { %4055 = vmatprep.mubr.f32.mxu1 %v1255_v57  ;;  %4069 = vmatpush3.msra.mxu1 %v1481_v63  ;;  %v1585_v57 = vld [vmem:[#allocation19 + $0x30] sm:$0xff] }
 0x65c   :  { %4056 = vmatmul.mubr.f32.gmra.mxu1 %v1256_v58  ;;  %4070 = vmatprep.subr.mxu1 %v1480_v4  ;;  %v1584_v58 = vld [vmem:[#allocation19 + $0x28] sm:$0xff] }
 0x65d   :  { %4071 = vmatpush3.msra.mxu1 %v1480_v4 }
 0x65e   :  { %4072 = vmatprep.subr.mxu1 %v1479_v12 }
 0x65f   :  { %4073 = vmatpush3.msra.mxu1 %v1479_v12 }
 0x660   :  { %4074 = vmatprep.subr.mxu1 %v1478_v14 }
 0x661   :  { %4075 = vmatpush3.msra.mxu1 %v1478_v14 }
 0x662   :  { %4076 = vmatprep.subr.mxu1 %v1477_v18 }
 0x663   :  { %4077 = vmatpush3.msra.mxu1 %v1477_v18 }
 0x664   :  { %4078 = vmatprep.subr.mxu1 %v1476_v20 }
 0x665   :  { %4079 = vmatpush3.msra.mxu1 %v1476_v20 }
 0x666   :  { %4080 = vmatprep.subr.mxu1 %v1475_v26 }
 0x667   :  { %4081 = vmatpush3.msra.mxu1 %v1475_v26  ;;  %v3475_v26 = vld [vmem:[#allocation14] ss:$0 sm:$0xff] }
 0x668   :  { %4082 = vmatprep.subr.mxu1 %v1474_v27 }
 0x669   :  { %4083 = vmatpush3.msra.mxu1 %v1474_v27 }
 0x66a   :  { %4084 = vmatprep.subr.mxu1 %v1473_v30 }
 0x66b   :  { %4085 = vmatpush3.msra.mxu1 %v1473_v30 }
 0x66c   :  { %4086 = vmatprep.subr.mxu1 %v1472_v32 }
 0x66d   :  { %4087 = vmatpush3.msra.mxu1 %v1472_v32 }
 0x66e   :  { %4088 = vmatprep.subr.mxu1 %v1471_v33 }
 0x66f   :  { %4089 = vmatpush3.msra.mxu1 %v1471_v33 }
 0x670   :  { %4090 = vmatprep.subr.mxu1 %v1470_v37 }
 0x671   :  { %4091 = vmatpush3.msra.mxu1 %v1470_v37  ;;  %v3476_v37 = vld [vmem:[#allocation16] ss:$0 sm:$0xff] }
 0x672   :  { %4092 = vmatprep.subr.mxu1 %v1469_v36 }
 0x673   :  { %4093 = vmatpush3.msra.mxu1 %v1469_v36 }
 0x674   :  { %4094 = vmatprep.subr.mxu1 %v1468_v42 }
 0x675   :  { %4095 = vmatpush3.msra.mxu1 %v1468_v42 }
 0x676   :  { %4096 = vmatprep.subr.mxu1 %v1467_v15 }
 0x677   :  { %4097 = vmatpush3.msra.mxu1 %v1467_v15 }
 0x678   :  { %4142 = vmatprep.subr.mxu1 %v4961_v0 }
 0x718   :  { %v4054_v5 = vpop.f32.mrf.mxu1 }
 0x71a   :  { %v1323_v8 = vpop.f32.mrf.mxu1 }
 0x71b   :  { %4060 = vmatprep.mubr.msk.f32.mxu0 %vm386_vm1, %v1323_v8 }
 0x71c   :  { %v4057_v9 = vpop.f32.mrf.mxu1  ;;  %4061 = vmatmul.mubr.msk.f32.vlgmr.msra.gmra.mxu0 %vm386_vm1, %v4054_v5 }
 0x71d   :  { %4105 = vmatpush3.msra.mxu0 %v1594_v17 }
 0x71e   :  { %v1333_v11 = vpop.f32.mrf.mxu1  ;;  %4106 = vmatprep.subr.mxu0 %v1593_v45 }
 0x71f   :  { %4063 = vmatprep.mubr.msk.f32.mxu0 %vm386_vm1, %v1333_v11  ;;  %4107 = vmatpush3.msra.mxu0 %v1593_v45 }
 0x720   :  { %4064 = vmatmul.mubr.msk.f32.gmra.mxu0 %vm386_vm1, %v4057_v9  ;;  %4108 = vmatprep.subr.mxu0 %v1592_v21 }
 0x721   :  { %4109 = vmatpush3.msra.mxu0 %v1592_v21 }
 0x722   :  { %4110 = vmatprep.subr.mxu0 %v1591_v23 }
 0x723   :  { %4111 = vmatpush3.msra.mxu0 %v1591_v23 }
 0x724   :  { %4112 = vmatprep.subr.mxu0 %v1590_v47 }
 0x725   :  { %4113 = vmatpush3.msra.mxu0 %v1590_v47 }
 0x726   :  { %4114 = vmatprep.subr.mxu0 %v1589_v51 }
 0x727   :  { %4115 = vmatpush3.msra.mxu0 %v1589_v51 }
 0x728   :  { %4116 = vmatprep.subr.mxu0 %v1588_v52 }
 0x729   :  { %4117 = vmatpush3.msra.mxu0 %v1588_v52 }
 0x72a   :  { %4118 = vmatprep.subr.mxu0 %v1587_v53 }
 0x72b   :  { %4119 = vmatpush3.msra.mxu0 %v1587_v53 }
 0x72c   :  { %4120 = vmatprep.subr.mxu0 %v1586_v55 }
 0x72d   :  { %4121 = vmatpush3.msra.mxu0 %v1586_v55  ;;  %v3478_v55 = vld [vmem:[%s5725_s16] ss:$0 sm:$0xff] }
 0x72e   :  { %4122 = vmatprep.subr.mxu0 %v1585_v57 }
 0x72f   :  { %4123 = vmatpush3.msra.mxu0 %v1585_v57 }
 0x730   :  { %4124 = vmatprep.subr.mxu0 %v1584_v58 }
 0x731   :  { %4125 = vmatpush3.msra.mxu0 %v1584_v58 }
 0x732   :  { %4126 = vmatprep.subr.mxu0 %v1583_v60 }
 0x733   :  { %4127 = vmatpush3.msra.mxu0 %v1583_v60 }
 0x7dc   :  { %v4062_v63 = vpop.f32.mrf.mxu0 }
 0x7dd   :  { %v1426_v4 = vadd.f32 1e-05, %v4062_v63 }
 0x7de   :  { %v1420_v5 = vpop.f32.mrf.mxu0 }
 0x7df   :  { %4488 = vrsqrt.f32 %v1426_v4  ;;  %v1421_v8 = vadd.f32 1e-05, %v1420_v5 }
 0x7e0   :  { %v4065_v9 = vpop.f32.mrf.mxu0 }
 0x7e1   :  { %4490 = vrsqrt.f32 %v1421_v8  ;;  %v1436_v11 = vadd.f32 1e-05, %v4065_v9 }
 0x7e2   :  { %v1430_v12 = vpop.f32.mrf.mxu0 }
 0x7e3   :  { %4492 = vrsqrt.f32 %v1436_v11  ;;  %v1431_v14 = vadd.f32 1e-05, %v1430_v12  ;;  %v5411_v12 = vld [vmem:[%s5737_s1 + $0x68] sm:$0xff] }
 0x7e5   :  { %4494 = vrsqrt.f32 %v1431_v14  ;;  %v5418_v14 = vld [vmem:[%s5737_s1 + $0x60] sm:$0xff] }
 0x7ec   :  { %v4489_v18 = vpop.eup %4488 }
 0x7ed   :  { %v1444_v20 = vmul.f32 %v4489_v18, %v5301_v46  ;;  %v5425_v18 = vld [vmem:[%s5737_s1 + $0x58] sm:$0xff] }
 0x7ee   :  { %v4491_v27 = vpop.eup %4490 }
 0x7ef   :  { %v1443_v30 = vmul.f32 %v4491_v27, %v5304_v50  ;;  %v1454_v33 = vmul.f32 %v3475_v26, %v1444_v20  ;;  %v5432_v20 = vld [vmem:[%s5737_s1 + $0x50] sm:$0xff]  ;;  %v5446_v27 = vld [vmem:[%s5737_s1 + $0x40] sm:$0xff] }
 0x7f0   :  { %v4493_v32 = vpop.eup %4492 }
 0x7f1   :  { %v1453_v36 = vmul.f32 %v3475_v26, %v1443_v30  ;;  %v1446_v42 = vmul.f32 %v4493_v32, %v5311_v54  ;;  %v1464_v21 = vadd.f32 %v3476_v37, %v1454_v33  ;;  %v5372_v54 = vld [vmem:[%s5737_s1 + $0x78] sm:$0xff]  ;;  %v5460_v32 = vld [vmem:[%s5737_s1 + $0x30] sm:$0xff]  ;;  %v5467_v33 = vld [vmem:[%s5737_s1 + $0x28] sm:$0xff] }
 0x7f2   :  { %v4495_v15 = vpop.eup %4494  ;;  %v5453_v30 = vld [vmem:[%s5737_s1 + $0x38] sm:$0xff] }
 0x7f3   :  { %v1463_v17 = vadd.f32 %v3476_v37, %v1453_v36  ;;  %v1445_v45 = vmul.f32 %v4495_v15, %v5314_v56  ;;  %v1456_v23 = vmul.f32 %v3475_v26, %v1446_v42  ;;  %v5481_v36 = vld [vmem:[%s5737_s1 + $0x18] sm:$0xff]  ;;  %v5488_v42 = vld [vmem:[%s5737_s1 + $0x10] sm:$0xff]  ;;  %v5495_v15 = vld [vmem:[%s5737_s1 + $0x8] sm:$0xff] }
 0x7f5   :  { %4098 = vmatprep.mubr.f32.mxu1 %v1463_v17  ;;  %v1455_v47 = vmul.f32 %v3475_v26, %v1445_v45  ;;  %v1466_v51 = vadd.f32 %v3476_v37, %v1456_v23  ;;  %v5439_v26 = vld [vmem:[%s5737_s1 + $0x48] sm:$0xff]  ;;  %v5502_v17 = vld [vmem:[%s5737_s1] sm:$0xff] }
 0x7f6   :  { %4099 = vmatmul.mubr.f32.vlgmr.msra.gmra.mxu1 %v1464_v21 }
 0x7f7   :  { %v1465_v46 = vadd.f32 %v3476_v37, %v1455_v47  ;;  %4143 = vmatpush3.msra.mxu1 %v4961_v0  ;;  %v1582_v0 = vld [vmem:[#allocation19 + $0x18] sm:$0xff]  ;;  %v5474_v37 = vld [vmem:[%s5737_s1 + $0x20] sm:$0xff] }
 0x7f8   :  { %4144 = vmatprep.subr.mxu1 %v4966_v1  ;;  %4128 = vmatprep.subr.mxu0 %v1582_v0 }
 0x7f9   :  { %4101 = vmatprep.mubr.f32.mxu1 %v1465_v46  ;;  %4145 = vmatpush3.msra.mxu1 %v4966_v1  ;;  %v1581_v1 = vld [vmem:[#allocation19 + $0x10] sm:$0xff] }
 0x7fa   :  { %4102 = vmatmul.mubr.f32.gmra.mxu1 %v1466_v51  ;;  %4146 = vmatprep.subr.mxu1 %v4973_v2 }
 0x7fb   :  { %4147 = vmatpush3.msra.mxu1 %v4973_v2  ;;  %4129 = vmatpush3.msra.mxu0 %v1582_v0  ;;  %v1580_v2 = vld [vmem:[#allocation19 + $0x8] sm:$0xff] }
 0x7fc   :  { %4148 = vmatprep.subr.mxu1 %v4980_v3  ;;  %4130 = vmatprep.subr.mxu0 %v1581_v1 }
 0x7fd   :  { %4149 = vmatpush3.msra.mxu1 %v4980_v3  ;;  %4131 = vmatpush3.msra.mxu0 %v1581_v1  ;;  %v1579_v3 = vld [vmem:[#allocation19] sm:$0xff] }
 0x7fe   :  { %4150 = vmatprep.subr.mxu1 %v4993_v6  ;;  %4132 = vmatprep.subr.mxu0 %v1580_v2 }
 0x7ff   :  { %4151 = vmatpush3.msra.mxu1 %v4993_v6  ;;  %4133 = vmatpush3.msra.mxu0 %v1580_v2  ;;  %v3477_v6 = vld [vmem:[%s5723_s14] ss:$0 sm:$0xff] }
 0x800   :  { %4152 = vmatprep.subr.mxu1 %v5006_v10  ;;  %4134 = vmatprep.subr.mxu0 %v1579_v3 }
 0x801   :  { %4153 = vmatpush3.msra.mxu1 %v5006_v10  ;;  %4135 = vmatpush3.msra.mxu0 %v1579_v3 }
 0x802   :  { %4154 = vmatprep.subr.mxu1 %v5013_v13  ;;  %4180 = vmatprep.subr.msk.mxu0 %vm399_vm0, %v5116_v24 }
 0x803   :  { %4155 = vmatpush3.msra.mxu1 %v5013_v13 }
 0x804   :  { %4156 = vmatprep.subr.mxu1 %v5020_v16 }
 0x805   :  { %4157 = vmatpush3.msra.mxu1 %v5020_v16 }
 0x806   :  { %4158 = vmatprep.subr.mxu1 %v5027_v19 }
 0x807   :  { %4159 = vmatpush3.msra.mxu1 %v5027_v19 }
 0x808   :  { %4160 = vmatprep.subr.mxu1 %v5034_v22 }
 0x809   :  { %4161 = vmatpush3.msra.mxu1 %v5034_v22 }
 0x80a   :  { %4162 = vmatprep.subr.mxu1 %v5041_v25 }
 0x80b   :  { %4163 = vmatpush3.msra.mxu1 %v5041_v25 }
 0x80c   :  { %4164 = vmatprep.subr.mxu1 %v5048_v28 }
 0x80d   :  { %4165 = vmatpush3.msra.mxu1 %v5048_v28 }
 0x80e   :  { %4166 = vmatprep.subr.mxu1 %v5057_v31 }
 0x80f   :  { %4167 = vmatpush3.msra.mxu1 %v5057_v31 }
 0x810   :  { %4168 = vmatprep.subr.mxu1 %v5068_v35 }
 0x811   :  { %4169 = vmatpush3.msra.mxu1 %v5068_v35 }
 0x812   :  { %4170 = vmatprep.subr.mxu1 %v5077_v40 }
 0x813   :  { %4171 = vmatpush3.msra.mxu1 %v5077_v40 }
 0x814   :  { %4172 = vmatprep.subr.mxu1 %v5084_v44 }
 0x815   :  { %4173 = vmatpush3.msra.mxu1 %v5084_v44 }
 0x816   :  { %4226 = vmatprep.subr.msk.mxu1 %vm399_vm0, %v5116_v24 }
 0x8b6   :  { %v4100_v10 = vpop.f32.mrf.mxu1 }
 0x8b7   :  { %v1562_v13 = vadd.f32 %v4100_v10, %v3477_v6 }
 0x8b8   :  { %v1556_v16 = vpop.f32.mrf.mxu1 }
 0x8b9   :  { %v1557_v19 = vadd.f32 %v3477_v6, %v1556_v16  ;;  %v1576_v28 = vmax.f32 %v1562_v13, 0.0 }
 0x8ba   :  { %v4103_v22 = vpop.f32.mrf.mxu1 }
 0x8bb   :  { %v1575_v25 = vmax.f32 %v1557_v19, 0.0  ;;  %v1572_v31 = vadd.f32 %v4103_v22, %v3477_v6 }
 0x8bc   :  { %v1566_v35 = vpop.f32.mrf.mxu1 }
 0x8bd   :  { %v1567_v40 = vadd.f32 %v3477_v6, %v1566_v35  ;;  %4136 = vmatprep.mubr.f32.mxu0 %v1575_v25  ;;  %v1578_v50 = vmax.f32 %v1572_v31, 0.0  ;;  %v3491_v25 = vld [vmem:[%s5718_s9 + $0x20] sm:$0xff] }
 0x8be   :  { %4137 = vmatmul.mubr.f32.vlgmr.msra.gmra.mxu0 %v1576_v28  ;;  %v3495_v28 = vld [vmem:[%s5718_s9 + $0x30] sm:$0xff] }
 0x8bf   :  { %v1577_v44 = vmax.f32 %v1567_v40, 0.0  ;;  %4181 = vmatpush3.msk.msra.mxu0 %vm399_vm0, %v5116_v24 }
 0x8c0   :  { %4188 = vmatprep.subr.mxu0 %v5372_v54 }
 0x8c1   :  { %4139 = vmatprep.mubr.f32.mxu0 %v1577_v44 }
 0x8c2   :  { %4140 = vmatmul.mubr.f32.gmra.mxu0 %v1578_v50 }
 0x97e   :  { %v4138_v56 = vpop.f32.mrf.mxu0 }
 0x97f   :  { %v1681_v52 = vadd.f32 %v4138_v56, %v5251_v41 }
 0x980   :  { %v1661_v53 = vpop.f32.mrf.mxu0 }
 0x981   :  { %v1680_v57 = vadd.f32 %v1661_v53, %v5248_v39  ;;  %v5382_v63 = vadd.f32 %v3478_v55, %v1681_v52 }
 0x982   :  { %v4141_v58 = vpop.f32.mrf.mxu0 }
 0x983   :  { %v5380_v60 = vadd.f32 %v3478_v55, %v1680_v57  ;;  %v1683_v4 = vadd.f32 %v4141_v58, %v5261_v43  ;;  %v3489_v57 = vld [vmem:[#allocation11 + $0x1] ss:$0 sm:$0xff] }
 0x984   :  { %v1671_v5 = vpop.f32.mrf.mxu0 }
 0x985   :  { %v1682_v8 = vadd.f32 %v1671_v5, %v5256_v38  ;;  %4174 = vmatprep.mubr.f32.mxu1 %v5380_v60  ;;  %v5392_v39 = vadd.f32 %v3478_v55, %v1683_v4  ;;  %v3490_v5 = vld [vmem:[#allocation13 + $0x1] ss:$0 sm:$0xff] }
 0x986   :  { %4175 = vmatmul.mubr.f32.vlgmr.msra.gmra.mxu1 %v5382_v63 }
 0x987   :  { %v5388_v41 = vadd.f32 %v3478_v55, %v1682_v8  ;;  %4227 = vmatpush3.msk.msra.mxu1 %vm399_vm0, %v5116_v24  ;;  %v5402_v24 = vld [vmem:[%s5737_s1 + $0x70] sm:$0xff] }
 0x989   :  { %4177 = vmatprep.mubr.f32.mxu1 %v5388_v41 }
 0x98a   :  { %4178 = vmatmul.mubr.f32.gmra.mxu1 %v5392_v39 }
 0xa46   :  { %v4176_v9 = vpop.f32.mrf.mxu1 }
 0xa48   :  { %v1765_v43 = vpop.f32.mrf.mxu1 }
 0xa49   :  { %4182 = vmatprep.mubr.msk.f32.mxu0 %vm386_vm1, %v1765_v43 }
 0xa4a   :  { %v4179_v38 = vpop.f32.mrf.mxu1  ;;  %4183 = vmatmul.mubr.msk.f32.vlgmr.msra.gmra.mxu0 %vm386_vm1, %v4176_v9 }
 0xa4b   :  { %4189 = vmatpush3.msra.mxu0 %v5372_v54 }
 0xa4c   :  { %v1775_v11 = vpop.f32.mrf.mxu1  ;;  %4190 = vmatprep.subr.mxu0 %v5402_v24 }
 0xa4d   :  { %4185 = vmatprep.mubr.msk.f32.mxu0 %vm386_vm1, %v1775_v11  ;;  %4191 = vmatpush3.msra.mxu0 %v5402_v24 }
 0xa4e   :  { %4186 = vmatmul.mubr.msk.f32.gmra.mxu0 %vm386_vm1, %v4179_v38  ;;  %4192 = vmatprep.subr.mxu0 %v5411_v12 }
 0xa4f   :  { %4193 = vmatpush3.msra.mxu0 %v5411_v12 }
 0xa50   :  { %4194 = vmatprep.subr.mxu0 %v5418_v14 }
 0xa51   :  { %4195 = vmatpush3.msra.mxu0 %v5418_v14 }
 0xa52   :  { %4196 = vmatprep.subr.mxu0 %v5425_v18 }
 0xa53   :  { %4197 = vmatpush3.msra.mxu0 %v5425_v18 }
 0xa54   :  { %4198 = vmatprep.subr.mxu0 %v5432_v20 }
 0xa55   :  { %4199 = vmatpush3.msra.mxu0 %v5432_v20 }
 0xa56   :  { %4200 = vmatprep.subr.mxu0 %v5439_v26 }
 0xa57   :  { %4201 = vmatpush3.msra.mxu0 %v5439_v26 }
 0xa58   :  { %4202 = vmatprep.subr.mxu0 %v5446_v27 }
 0xa59   :  { %4203 = vmatpush3.msra.mxu0 %v5446_v27 }
 0xa5a   :  { %4204 = vmatprep.subr.mxu0 %v5453_v30 }
 0xa5b   :  { %4205 = vmatpush3.msra.mxu0 %v5453_v30 }
 0xa5c   :  { %4206 = vmatprep.subr.mxu0 %v5460_v32 }
 0xa5d   :  { %4207 = vmatpush3.msra.mxu0 %v5460_v32 }
 0xa5e   :  { %4208 = vmatprep.subr.mxu0 %v5467_v33 }
 0xa5f   :  { %4209 = vmatpush3.msra.mxu0 %v5467_v33 }
 0xa60   :  { %4210 = vmatprep.subr.mxu0 %v5474_v37 }
 0xa61   :  { %4211 = vmatpush3.msra.mxu0 %v5474_v37 }
 0xa62   :  { %4212 = vmatprep.subr.mxu0 %v5481_v36 }
 0xa63   :  { %4213 = vmatpush3.msra.mxu0 %v5481_v36 }
 0xa64   :  { %4214 = vmatprep.subr.mxu0 %v5488_v42 }
 0xa65   :  { %4215 = vmatpush3.msra.mxu0 %v5488_v42 }
 0xa66   :  { %4216 = vmatprep.subr.mxu0 %v5495_v15 }
 0xa67   :  { %4217 = vmatpush3.msra.mxu0 %v5495_v15 }
 0xa68   :  { %4218 = vmatprep.subr.mxu0 %v5502_v17 }
 0xa69   :  { %4219 = vmatpush3.msra.mxu0 %v5502_v17 }
 0xb0a   :  { %v4184_v45 = vpop.f32.mrf.mxu0 }
 0xb0b   :  { %v1882_v21 = vsub.f32 %v5382_v63, %v4184_v45 }
 0xb0c   :  { %v1862_v23 = vpop.f32.mrf.mxu0 }
 0xb0d   :  { %v1881_v47 = vsub.f32 %v5380_v60, %v1862_v23  ;;  %v1886_v0 = vmul.f32 %v1882_v21, %v1882_v21 }
 0xb0e   :  { %v4187_v46 = vpop.f32.mrf.mxu0 }
 0xb0f   :  { %v1885_v51 = vmul.f32 %v1881_v47, %v1881_v47  ;;  %v1884_v1 = vsub.f32 %v5392_v39, %v4187_v46 }
 0xb10   :  { %v1872_v2 = vpop.f32.mrf.mxu0 }
 0xb11   :  { %v1883_v3 = vsub.f32 %v5388_v41, %v1872_v2  ;;  %4220 = vmatprep.mubr.f32.mxu0 %v1885_v51  ;;  %v1888_v10 = vmul.f32 %v1884_v1, %v1884_v1 }
 0xb12   :  { %4221 = vmatmul.mubr.f32.vlgmr.msra.gmra.mxu0 %v1886_v0 }
 0xb13   :  { %v1887_v6 = vmul.f32 %v1883_v3, %v1883_v3 }
 0xb15   :  { %4223 = vmatprep.mubr.f32.mxu0 %v1887_v6  ;;  %v5535_v6 = vld [vmem:[#allocation2] sm:$0x3] }
 0xb16   :  { %4224 = vmatmul.mubr.f32.gmra.mxu0 %v1888_v10 }
 0xb17   :  { %4245 = vmatprep.mubr.msk.f32.mxu0 %vm709_vm2, %v3495_v28 }
 0xbd2   :  { %v4222_v13 = vpop.f32.mrf.mxu0 }
 0xbd4   :  { %v1955_v16 = vpop.f32.mrf.mxu0 }
 0xbd5   :  { %4228 = vmatprep.mubr.msk.f32.mxu1 %vm386_vm1, %v1955_v16 }
 0xbd6   :  { %v4225_v19 = vpop.f32.mrf.mxu0  ;;  %4229 = vmatmul.mubr.msk.f32.vlgmr.msra.gmra.mxu1 %vm386_vm1, %v4222_v13 }
 0xbd8   :  { %v1965_v22 = vpop.f32.mrf.mxu0 }
 0xbd9   :  { %4231 = vmatprep.mubr.msk.f32.mxu1 %vm386_vm1, %v1965_v22  ;;  %v3500_v22 = vld [vmem:[%s5719_s10 + $0x18] sm:$0xff] }
 0xbda   :  { %4232 = vmatmul.mubr.msk.f32.gmra.mxu1 %vm386_vm1, %v4225_v19 }
 0xbdb   :  { %4238 = vmatprep.mubr.msk.f32.mxu1 %vm709_vm2, %v3491_v25 }
 0xc96   :  { %v4230_v31 = vpop.f32.mrf.mxu1 }
 0xc97   :  { %v2058_v35 = vadd.f32 1e-05, %v4230_v31 }
 0xc98   :  { %v2052_v40 = vpop.f32.mrf.mxu1 }
 0xc99   :  { %4496 = vrsqrt.f32 %v2058_v35  ;;  %v2053_v44 = vadd.f32 1e-05, %v2052_v40 }
 0xc9a   :  { %v4233_v50 = vpop.f32.mrf.mxu1 }
 0xc9b   :  { %4498 = vrsqrt.f32 %v2053_v44  ;;  %v2068_v56 = vadd.f32 1e-05, %v4233_v50  ;;  %v3499_v44 = vld [vmem:[%s5719_s10 + $0x10] sm:$0xff] }
 0xc9c   :  { %v2062_v52 = vpop.f32.mrf.mxu1 }
 0xc9d   :  { %4500 = vrsqrt.f32 %v2068_v56  ;;  %v2063_v53 = vadd.f32 1e-05, %v2062_v52 }
 0xc9f   :  { %4502 = vrsqrt.f32 %v2063_v53 }
 0xca6   :  { %v4497_v55 = vpop.eup %4496 }
 0xca7   :  { %v2076_v58 = vmul.f32 %v4497_v55, %v1882_v21  ;;  %v3492_v21 = vld [vmem:[%s5718_s9 + $0x28] sm:$0xff] }
 0xca8   :  { %v4499_v4 = vpop.eup %4498 }
 0xca9   :  { %v2086_v8 = vmul.f32 %v3489_v57, %v2076_v58  ;;  %v2075_v9 = vmul.f32 %v4499_v4, %v1881_v47  ;;  %v3496_v47 = vld [vmem:[%s5718_s9 + $0x38] sm:$0xff] }
 0xcaa   :  { %v4501_v43 = vpop.eup %4500 }
 0xcab   :  { %v2096_v38 = vadd.f32 %v3490_v5, %v2086_v8  ;;  %v2085_v11 = vmul.f32 %v3489_v57, %v2075_v9  ;;  %v2078_v45 = vmul.f32 %v4501_v43, %v1884_v1 }
 0xcac   :  { %v4503_v23 = vpop.eup %4502 }
 0xcad   :  { %4234 = vmatprep.subr.mxu1 %v2096_v38  ;;  %4241 = vmatprep.subr.mxu0 %v2096_v38  ;;  %v2095_v46 = vadd.f32 %v3490_v5, %v2085_v11  ;;  %v2088_v51 = vmul.f32 %v3489_v57, %v2078_v45  ;;  %v2077_v0 = vmul.f32 %v4503_v23, %v1883_v3 }
 0xcae   :  { %4235 = vmatpush3.msra.mxu1 %v2096_v38  ;;  %4242 = vmatpush3.msra.mxu0 %v2096_v38 }
 0xcaf   :  { %4236 = vmatprep.subr.mxu1 %v2095_v46  ;;  %4243 = vmatprep.subr.mxu0 %v2095_v46  ;;  %v2098_v2 = vadd.f32 %v3490_v5, %v2088_v51  ;;  %v2087_v1 = vmul.f32 %v3489_v57, %v2077_v0 }
 0xcb0   :  { %4237 = vmatpush3.msra.mxu1 %v2095_v46  ;;  %4244 = vmatpush3.msra.mxu0 %v2095_v46 }
 0xcb1   :  { %4239 = vmatmul.mubr.msk.f32.vlgmr.msra.gmra.mxu1 %vm709_vm2, %v3492_v21  ;;  %4246 = vmatmul.mubr.msk.f32.vlgmr.msra.gmra.mxu0 %vm709_vm2, %v3496_v47  ;;  %v2097_v3 = vadd.f32 %v3490_v5, %v2087_v1 }
 0xcb2   :  { %4248 = vmatprep.subr.mxu1 %v2098_v2  ;;  %4255 = vmatprep.subr.mxu0 %v2098_v2 }
 0xcb3   :  { %4249 = vmatpush3.msra.mxu1 %v2098_v2  ;;  %4256 = vmatpush3.msra.mxu0 %v2098_v2 }
 0xcb4   :  { %4250 = vmatprep.subr.mxu1 %v2097_v3  ;;  %4257 = vmatprep.subr.mxu0 %v2097_v3 }
 0xcb5   :  { %4251 = vmatpush3.msra.mxu1 %v2097_v3  ;;  %4252 = vmatprep.mubr.msk.f32.mxu1 %vm709_vm2, %v3491_v25 }
 0xcb6   :  { %4258 = vmatpush3.msra.mxu0 %v2097_v3  ;;  %4259 = vmatprep.mubr.msk.f32.mxu0 %vm709_vm2, %v3495_v28 }
 0xcb7   :  { %4253 = vmatmul.mubr.msk.f32.vlgmr.msra.gmra.mxu1 %vm709_vm2, %v3492_v21  ;;  %4260 = vmatmul.mubr.msk.f32.vlgmr.msra.gmra.mxu0 %vm709_vm2, %v3496_v47 }
 0xcb8   :  { %4262 = vmatprep.subr.mxu1 %v5372_v54  ;;  %4300 = vmatprep.subr.msk.mxu0 %vm399_vm0, %v5535_v6 }
 0xcb9   :  { %4263 = vmatpush3.msra.mxu1 %v5372_v54  ;;  %4301 = vmatpush3.msk.msra.mxu0 %vm399_vm0, %v5535_v6 }
 0xcba   :  { %4264 = vmatprep.subr.mxu1 %v5402_v24  ;;  %4308 = vmatprep.subr.mxu0 %v5372_v54 }
 0xcbb   :  { %4265 = vmatpush3.msra.mxu1 %v5402_v24 }
 0xcbc   :  { %4266 = vmatprep.subr.mxu1 %v5411_v12 }
 0xcbd   :  { %4267 = vmatpush3.msra.mxu1 %v5411_v12 }
 0xcbe   :  { %4268 = vmatprep.subr.mxu1 %v5418_v14 }
 0xcbf   :  { %4269 = vmatpush3.msra.mxu1 %v5418_v14 }
 0xcc0   :  { %4270 = vmatprep.subr.mxu1 %v5425_v18 }
 0xcc1   :  { %4271 = vmatpush3.msra.mxu1 %v5425_v18 }
 0xcc2   :  { %4272 = vmatprep.subr.mxu1 %v5432_v20 }
 0xcc3   :  { %4273 = vmatpush3.msra.mxu1 %v5432_v20 }
 0xcc4   :  { %4274 = vmatprep.subr.mxu1 %v5439_v26 }
 0xcc5   :  { %4275 = vmatpush3.msra.mxu1 %v5439_v26 }
 0xcc6   :  { %4276 = vmatprep.subr.mxu1 %v5446_v27 }
 0xcc7   :  { %4277 = vmatpush3.msra.mxu1 %v5446_v27 }
 0xcc8   :  { %4278 = vmatprep.subr.mxu1 %v5453_v30 }
 0xcc9   :  { %4279 = vmatpush3.msra.mxu1 %v5453_v30 }
 0xcca   :  { %4280 = vmatprep.subr.mxu1 %v5460_v32 }
 0xccb   :  { %4281 = vmatpush3.msra.mxu1 %v5460_v32 }
 0xccc   :  { %4282 = vmatprep.subr.mxu1 %v5467_v33 }
 0xccd   :  { %4283 = vmatpush3.msra.mxu1 %v5467_v33 }
 0xcce   :  { %4284 = vmatprep.subr.mxu1 %v5474_v37 }
 0xccf   :  { %4285 = vmatpush3.msra.mxu1 %v5474_v37 }
 0xcd0   :  { %4286 = vmatprep.subr.mxu1 %v5481_v36 }
 0xcd1   :  { %4287 = vmatpush3.msra.mxu1 %v5481_v36 }
 0xcd2   :  { %4288 = vmatprep.subr.mxu1 %v5488_v42 }
 0xcd3   :  { %4289 = vmatpush3.msra.mxu1 %v5488_v42 }
 0xcd4   :  { %4290 = vmatprep.subr.mxu1 %v5495_v15 }
 0xcd5   :  { %4291 = vmatpush3.msra.mxu1 %v5495_v15 }
 0xcd6   :  { %4292 = vmatprep.subr.mxu1 %v5502_v17 }
 0xcd7   :  { %4293 = vmatpush3.msra.mxu1 %v5502_v17 }
 0xcd8   :  { %4346 = vmatprep.subr.msk.mxu1 %vm399_vm0, %v5535_v6 }
 0xd71   :  { %v4240_v10 = vpop.f32.mrf.mxu1  ;;  %v4247_v13 = vpop.f32.mrf.mxu0 }
 0xd72   :  { %v2184_v16 = vmul.f32 %v4240_v10, %v5229_v48  ;;  %v2270_v19 = vmul.f32 %v4247_v13, %v5231_v49  ;;  %v2860_v10 = vld [vmem:[#allocation17 + $0xd8] sm:$0xff]  ;;  %v2859_v13 = vld [vmem:[#allocation17 + $0xd0] sm:$0xff] }
 0xd73   :  { %v2174_v25 = vpop.f32.mrf.mxu1  ;;  %v2260_v28 = vpop.f32.mrf.mxu0 }
 0xd74   :  { %v2272_v31 = vadd.f32 %v2270_v19, %v2184_v16  ;;  %v2183_v35 = vmul.f32 %v5229_v48, %v2174_v25  ;;  %v2269_v40 = vmul.f32 %v5231_v49, %v2260_v28  ;;  %v2858_v16 = vld [vmem:[#allocation17 + $0xc8] sm:$0xff]  ;;  %v2857_v19 = vld [vmem:[#allocation17 + $0xc0] sm:$0xff]  ;;  %v2855_v25 = vld [vmem:[#allocation17 + $0xb0] sm:$0xff] }
 0xd75   :  { %v2854_v28 = vld [vmem:[#allocation17 + $0xa8] sm:$0xff] }
 0xd76   :  { %v2277_v50 = vadd.f32 %v3500_v22, %v2272_v31  ;;  %v2271_v56 = vadd.f32 %v2269_v40, %v2183_v35  ;;  %v2853_v31 = vld [vmem:[#allocation17 + $0xa0] sm:$0xff]  ;;  %v2852_v35 = vld [vmem:[#allocation17 + $0x98] sm:$0xff]  ;;  %v2851_v40 = vld [vmem:[#allocation17 + $0x90] sm:$0xff] }
 0xd77   :  { %v4254_v52 = vpop.f32.mrf.mxu1  ;;  %v4261_v53 = vpop.f32.mrf.mxu0 }
 0xd78   :  { %v2276_v55 = vadd.f32 %v3499_v44, %v2271_v56  ;;  %v2356_v57 = vmul.f32 %v4254_v52, %v5229_v48  ;;  %v2433_v58 = vmul.f32 %v4261_v53, %v5231_v49  ;;  %v2279_v4 = vmax.f32 %v2277_v50, 0.0  ;;  %v2849_v50 = vld [vmem:[#allocation17 + $0x80] sm:$0xff]  ;;  %v2978_v56 = vld [vmem:[#allocation19 + $0xf8] sm:$0xff]  ;;  %v2977_v52 = vld [vmem:[#allocation19 + $0xf0] sm:$0xff] }
 0xd79   :  { %v2346_v5 = vpop.f32.mrf.mxu1  ;;  %v2423_v8 = vpop.f32.mrf.mxu0  ;;  %v2976_v53 = vld [vmem:[#allocation19 + $0xe8] sm:$0xff] }
 0xd7a   :  { %v2278_v9 = vmax.f32 %v2276_v55, 0.0  ;;  %v2435_v43 = vadd.f32 %v2433_v58, %v2356_v57  ;;  %v2355_v38 = vmul.f32 %v5229_v48, %v2346_v5  ;;  %v2432_v11 = vmul.f32 %v5231_v49, %v2423_v8  ;;  %v2975_v55 = vld [vmem:[#allocation19 + $0xe0] sm:$0xff]  ;;  %v2974_v57 = vld [vmem:[#allocation19 + $0xd8] sm:$0xff]  ;;  %v2973_v58 = vld [vmem:[#allocation19 + $0xd0] sm:$0xff] }
 0xd7b   :  { %v5593_v46 = vadd.f32 %v2279_v4, %v5382_v63  ;;  %v2972_v4 = vld [vmem:[#allocation19 + $0xc8] sm:$0xff]  ;;  %v2971_v5 = vld [vmem:[#allocation19 + $0xc0] sm:$0xff]  ;;  %v2970_v8 = vld [vmem:[#allocation19 + $0xb8] sm:$0xff] }
 0xd7c   :  { %v2437_v45 = vadd.f32 %v3500_v22, %v2435_v43  ;;  %v5590_v23 = vadd.f32 %v2278_v9, %v5380_v60  ;;  %v2434_v51 = vadd.f32 %v2432_v11, %v2355_v38  ;;  %v2856_v22 = vld [vmem:[#allocation17 + $0xb8] sm:$0xff]  ;;  %v2969_v9 = vld [vmem:[#allocation19 + $0xb0] sm:$0xff]  ;;  %v2968_v43 = vld [vmem:[#allocation19 + $0xa8] sm:$0xff] }
 0xd7d   :  { %v2967_v38 = vld [vmem:[#allocation19 + $0xa0] sm:$0xff] }
 0xd7e   :  { %4294 = vmatprep.mubr.f32.mxu1 %v5590_v23  ;;  %v2436_v0 = vadd.f32 %v3499_v44, %v2434_v51  ;;  %v2439_v21 = vmax.f32 %v2437_v45, 0.0  ;;  %v2850_v44 = vld [vmem:[#allocation17 + $0x88] sm:$0xff] }
 0xd7f   :  { %4295 = vmatmul.mubr.f32.vlgmr.msra.gmra.mxu1 %v5593_v46 }
 0xd80   :  { %4347 = vmatpush3.msk.msra.mxu1 %vm399_vm0, %v5535_v6  ;;  %v2438_v48 = vmax.f32 %v2436_v0, 0.0  ;;  %v5603_v60 = vadd.f32 %v2439_v21, %v5392_v39  ;;  %v2861_v6 = vld [vmem:[#allocation17 + $0xe0] sm:$0xff] }
 0xd81   :  { %4392 = vmatprep.subr.mxu1 %v2978_v56 }
 0xd82   :  { %v5600_v49 = vadd.f32 %v2438_v48, %v5388_v41 }
 0xd84   :  { %4297 = vmatprep.mubr.f32.mxu1 %v5600_v49 }
 0xd85   :  { %4298 = vmatmul.mubr.f32.gmra.mxu1 %v5603_v60 }
 0xe3f   :  { %v4296_v63 = vpop.f32.mrf.mxu1 }
 0xe41   :  { %v2514_v47 = vpop.f32.mrf.mxu1 }
 0xe42   :  { %4302 = vmatprep.mubr.msk.f32.mxu0 %vm386_vm1, %v2514_v47 }
 0xe43   :  { %4303 = vmatmul.mubr.msk.f32.vlgmr.msra.gmra.mxu0 %vm386_vm1, %v4296_v63 }
 0xe44   :  { %4309 = vmatpush3.msra.mxu0 %v5372_v54 }
 0xe45   :  { %4310 = vmatprep.subr.mxu0 %v5402_v24  ;;  %v4299_v2 = vpop.f32.mrf.mxu1 }
 0xe46   :  { %4311 = vmatpush3.msra.mxu0 %v5402_v24 }
 0xe47   :  { %4312 = vmatprep.subr.mxu0 %v5411_v12  ;;  %v2524_v41 = vpop.f32.mrf.mxu1 }
 0xe48   :  { %4313 = vmatpush3.msra.mxu0 %v5411_v12  ;;  %4305 = vmatprep.mubr.msk.f32.mxu0 %vm386_vm1, %v2524_v41 }
 0xe49   :  { %4314 = vmatprep.subr.mxu0 %v5418_v14  ;;  %4306 = vmatmul.mubr.msk.f32.gmra.mxu0 %vm386_vm1, %v4299_v2 }
 0xe4a   :  { %4315 = vmatpush3.msra.mxu0 %v5418_v14 }
 0xe4b   :  { %4316 = vmatprep.subr.mxu0 %v5425_v18 }
 0xe4c   :  { %4317 = vmatpush3.msra.mxu0 %v5425_v18 }
 0xe4d   :  { %4318 = vmatprep.subr.mxu0 %v5432_v20 }
 0xe4e   :  { %4319 = vmatpush3.msra.mxu0 %v5432_v20 }
 0xe4f   :  { %4320 = vmatprep.subr.mxu0 %v5439_v26 }
 0xe50   :  { %4321 = vmatpush3.msra.mxu0 %v5439_v26 }
 0xe51   :  { %4322 = vmatprep.subr.mxu0 %v5446_v27 }
 0xe52   :  { %4323 = vmatpush3.msra.mxu0 %v5446_v27 }
 0xe53   :  { %4324 = vmatprep.subr.mxu0 %v5453_v30 }
 0xe54   :  { %4325 = vmatpush3.msra.mxu0 %v5453_v30 }
 0xe55   :  { %4326 = vmatprep.subr.mxu0 %v5460_v32 }
 0xe56   :  { %4327 = vmatpush3.msra.mxu0 %v5460_v32 }
 0xe57   :  { %4328 = vmatprep.subr.mxu0 %v5467_v33 }
 0xe58   :  { %4329 = vmatpush3.msra.mxu0 %v5467_v33 }
 0xe59   :  { %4330 = vmatprep.subr.mxu0 %v5474_v37 }
 0xe5a   :  { %4331 = vmatpush3.msra.mxu0 %v5474_v37  ;;  %v2864_v37 = vld [vmem:[#allocation17 + $0xf8] sm:$0xff] }
 0xe5b   :  { %4332 = vmatprep.subr.mxu0 %v5481_v36 }
 0xe5c   :  { %4333 = vmatpush3.msra.mxu0 %v5481_v36  ;;  %v2863_v36 = vld [vmem:[#allocation17 + $0xf0] sm:$0xff] }
 0xe5d   :  { %4334 = vmatprep.subr.mxu0 %v5488_v42 }
 0xe5e   :  { %4335 = vmatpush3.msra.mxu0 %v5488_v42  ;;  %v2862_v42 = vld [vmem:[#allocation17 + $0xe8] sm:$0xff] }
 0xe5f   :  { %4336 = vmatprep.subr.mxu0 %v5495_v15 }
 0xe60   :  { %4337 = vmatpush3.msra.mxu0 %v5495_v15 }
 0xe61   :  { %4338 = vmatprep.subr.mxu0 %v5502_v17 }
 0xe62   :  { %4339 = vmatpush3.msra.mxu0 %v5502_v17 }
 0xe63   :  { %4354 = vmatprep.subr.mxu0 %v2864_v37 }
 0xf03   :  { %v4304_v54 = vpop.f32.mrf.mxu0 }
 0xf04   :  { %v5643_v39 = vsub.f32 %v5593_v46, %v4304_v54  ;;  %v3515_v54 = vld [vmem:[#allocation14 + $0x1] ss:$0 sm:$0xff] }
 0xf05   :  { %v2611_v24 = vpop.f32.mrf.mxu0 }
 0xf06   :  { %v5646_v12 = vsub.f32 %v5590_v23, %v2611_v24  ;;  %v2635_v18 = vmul.f32 %v5643_v39, %v5643_v39 }
 0xf08   :  { %v2634_v14 = vmul.f32 %v5646_v12, %v5646_v12 }
 0xf09   :  { %v4307_v20 = vpop.f32.mrf.mxu0 }
 0xf0a   :  { %4340 = vmatprep.mubr.f32.mxu0 %v2634_v14  ;;  %v5653_v26 = vsub.f32 %v5603_v60, %v4307_v20  ;;  %v3516_v20 = vld [vmem:[#allocation16 + $0x1] ss:$0 sm:$0xff] }
 0xf0b   :  { %4341 = vmatmul.mubr.f32.vlgmr.msra.gmra.mxu0 %v2635_v18  ;;  %v2621_v27 = vpop.f32.mrf.mxu0 }
 0xf0c   :  { %v5656_v30 = vsub.f32 %v5600_v49, %v2621_v27  ;;  %v2637_v33 = vmul.f32 %v5653_v26, %v5653_v26  ;;  %4355 = vmatpush3.msra.mxu0 %v2864_v37 }
 0xf0d   :  { %4356 = vmatprep.subr.mxu0 %v2863_v36 }
 0xf0e   :  { %v2636_v32 = vmul.f32 %v5656_v30, %v5656_v30  ;;  %4357 = vmatpush3.msra.mxu0 %v2863_v36 }
 0xf0f   :  { %4358 = vmatprep.subr.mxu0 %v2862_v42 }
 0xf10   :  { %4343 = vmatprep.mubr.f32.mxu0 %v2636_v32  ;;  %4359 = vmatpush3.msra.mxu0 %v2862_v42 }
 0xf11   :  { %4344 = vmatmul.mubr.f32.gmra.mxu0 %v2637_v33  ;;  %4360 = vmatprep.subr.mxu0 %v2861_v6 }
 0xf12   :  { %4361 = vmatpush3.msra.mxu0 %v2861_v6  ;;  %v2965_v6 = vld [vmem:[#allocation19 + $0x90] sm:$0xff] }
 0xf13   :  { %4362 = vmatprep.subr.mxu0 %v2860_v10 }
 0xf14   :  { %4363 = vmatpush3.msra.mxu0 %v2860_v10  ;;  %v2964_v10 = vld [vmem:[#allocation19 + $0x88] sm:$0xff] }
 0xf15   :  { %4364 = vmatprep.subr.mxu0 %v2859_v13 }
 0xf16   :  { %4365 = vmatpush3.msra.mxu0 %v2859_v13 }
 0xf17   :  { %4366 = vmatprep.subr.mxu0 %v2858_v16 }
 0xf18   :  { %4367 = vmatpush3.msra.mxu0 %v2858_v16 }
 0xf19   :  { %4368 = vmatprep.subr.mxu0 %v2857_v19 }
 0xf1a   :  { %4369 = vmatpush3.msra.mxu0 %v2857_v19 }
 0xf1b   :  { %4370 = vmatprep.subr.mxu0 %v2856_v22 }
 0xf1c   :  { %4371 = vmatpush3.msra.mxu0 %v2856_v22 }
 0xf1d   :  { %4372 = vmatprep.subr.mxu0 %v2855_v25 }
 0xf1e   :  { %4373 = vmatpush3.msra.mxu0 %v2855_v25 }
 0xf1f   :  { %4374 = vmatprep.subr.mxu0 %v2854_v28 }
 0xf20   :  { %4375 = vmatpush3.msra.mxu0 %v2854_v28 }
 0xf21   :  { %4376 = vmatprep.subr.mxu0 %v2853_v31 }
 0xf22   :  { %4377 = vmatpush3.msra.mxu0 %v2853_v31 }
 0xf23   :  { %4378 = vmatprep.subr.mxu0 %v2852_v35 }
 0xf24   :  { %4379 = vmatpush3.msra.mxu0 %v2852_v35 }
 0xf25   :  { %4380 = vmatprep.subr.mxu0 %v2851_v40 }
 0xf26   :  { %4381 = vmatpush3.msra.mxu0 %v2851_v40 }
 0xf27   :  { %4382 = vmatprep.subr.mxu0 %v2850_v44 }
 0xf28   :  { %4383 = vmatpush3.msra.mxu0 %v2850_v44 }
 0xf29   :  { %4384 = vmatprep.subr.mxu0 %v2849_v50 }
 0xf2a   :  { %4385 = vmatpush3.msra.mxu0 %v2849_v50 }
 0xfcb   :  { %v4342_v15 = vpop.f32.mrf.mxu0 }
 0xfcd   :  { %v2704_v17 = vpop.f32.mrf.mxu0 }
 0xfce   :  { %4348 = vmatprep.mubr.msk.f32.mxu1 %vm386_vm1, %v2704_v17 }
 0xfcf   :  { %4349 = vmatmul.mubr.msk.f32.vlgmr.msra.gmra.mxu1 %vm386_vm1, %v4342_v15 }
 0xfd0   :  { %4393 = vmatpush3.msra.mxu1 %v2978_v56 }
 0xfd1   :  { %v4345_v1 = vpop.f32.mrf.mxu0  ;;  %4394 = vmatprep.subr.mxu1 %v2977_v52 }
 0xfd2   :  { %4395 = vmatpush3.msra.mxu1 %v2977_v52  ;;  %v4801_v52 = vmov 0.0  }
 0xfd3   :  { %v2714_v3 = vpop.f32.mrf.mxu0  ;;  %4396 = vmatprep.subr.mxu1 %v2976_v53  ;;  %4430 = vmatprep.subr.mxu0 %v4801_v52 }
 0xfd4   :  { %4351 = vmatprep.mubr.msk.f32.mxu1 %vm386_vm1, %v2714_v3  ;;  %4397 = vmatpush3.msra.mxu1 %v2976_v53 }
 0xfd5   :  { %4352 = vmatmul.mubr.msk.f32.gmra.mxu1 %vm386_vm1, %v4345_v1  ;;  %4398 = vmatprep.subr.mxu1 %v2975_v55 }
 0xfd6   :  { %4399 = vmatpush3.msra.mxu1 %v2975_v55  ;;  %v3520_v55 = vld [vmem:[%s5725_s16 + $0x1] ss:$0 sm:$0xff] }
 0xfd7   :  { %4400 = vmatprep.subr.mxu1 %v2974_v57 }
 0xfd8   :  { %4401 = vmatpush3.msra.mxu1 %v2974_v57 }
 0xfd9   :  { %4402 = vmatprep.subr.mxu1 %v2973_v58 }
 0xfda   :  { %4403 = vmatpush3.msra.mxu1 %v2973_v58 }
 0xfdb   :  { %4404 = vmatprep.subr.mxu1 %v2972_v4 }
 0xfdc   :  { %4405 = vmatpush3.msra.mxu1 %v2972_v4 }
 0xfdd   :  { %4406 = vmatprep.subr.mxu1 %v2971_v5 }
 0xfde   :  { %4407 = vmatpush3.msra.mxu1 %v2971_v5 }
 0xfdf   :  { %4408 = vmatprep.subr.mxu1 %v2970_v8 }
 0xfe0   :  { %4409 = vmatpush3.msra.mxu1 %v2970_v8 }
 0xfe1   :  { %4410 = vmatprep.subr.mxu1 %v2969_v9 }
 0xfe2   :  { %4411 = vmatpush3.msra.mxu1 %v2969_v9  ;;  %v3080_v9 = vld [vmem:[%s5726_s17] sm:$0xff] }
 0xfe3   :  { %4412 = vmatprep.subr.mxu1 %v2968_v43 }
 0xfe4   :  { %4413 = vmatpush3.msra.mxu1 %v2968_v43  ;;  %v3522_v43 = vld [vmem:[%s5726_s17 + $0x8] sm:$0xff] }
 0xfe5   :  { %4414 = vmatprep.subr.mxu1 %v2967_v38 }
 0xfe6   :  { %4415 = vmatpush3.msra.mxu1 %v2967_v38 }
0x108f   :  { %v4350_v11 = vpop.f32.mrf.mxu1 }
0x1090   :  { %v2807_v45 = vadd.f32 1e-05, %v4350_v11 }
0x1091   :  { %v2801_v51 = vpop.f32.mrf.mxu1 }
0x1092   :  { %4504 = vrsqrt.f32 %v2807_v45  ;;  %v2802_v0 = vadd.f32 1e-05, %v2801_v51 }
0x1094   :  { %4506 = vrsqrt.f32 %v2802_v0 }
0x1095   :  { %v4353_v21 = vpop.f32.mrf.mxu1 }
0x1096   :  { %v2817_v48 = vadd.f32 1e-05, %v4353_v21  ;;  %v4529_v21 = vld [vmem:[#allocation5] ss:$0 sm:$0xff] }
0x1097   :  { %v2811_v63 = vpop.f32.mrf.mxu1 }
0x1098   :  { %4508 = vrsqrt.f32 %v2817_v48  ;;  %v2812_v47 = vadd.f32 1e-05, %v2811_v63 }
0x109a   :  { %4510 = vrsqrt.f32 %v2812_v47  ;;  %v3232_v47 = vld [vmem:[%s5727_s18] sm:$0xff]  ;;  %s4803_s18 = smov [#allocation20]  }
0x109b   :  { %s3422_s12 = sshll.u32 %s4803_s18, 4  ;;  %s3423_s12 = int_to_ptr.vmem [resolvable:$true] %s3422_s12 }
0x109c   :  { %s4752_s21 = scalar_lea.vmem %s3423_s12, 256  ;;  %p4757_p0 = scmp.lt.s32.totalorder %s3423_s12, %s3423_s12 }
0x109d   :  { %p4753_p13 = scmp.ne.s32.totalorder %s3423_s12, %s4752_s21  ;;  %p4758_p1 = scmp.lt.s32.totalorder %s4752_s21, %s4752_s21 }
0x109f   :  { %v4505_v2 = vpop.eup %4504  ;;  %p4759_p2 = por %p4758_p1, %p4757_p0 }
0x10a0   :  { %v2825_v41 = vmul.f32 %v4505_v2, %v5643_v39 }
0x10a1   :  { %v4507_v24 = vpop.eup %4506  ;;  %p4760_p3 = pnand %p4759_p2, %p4753_p13 }
0x10a2   :  { %v2824_v14 = vmul.f32 %v4507_v24, %v5646_v12  ;;  %v2835_v18 = vmul.f32 %v3515_v54, %v2825_v41  ;;  %v2966_v12 = vld [vmem:[#allocation19 + $0x98] sm:$0xff]  ;;  %v3526_v24 = vld [vmem:[#allocation5] ss:$0 sm:$0xff] }
0x10a3   :  { %4416 = vmatprep.subr.mxu1 %v2966_v12 }
0x10a4   :  { %v2834_v27 = vmul.f32 %v3515_v54, %v2824_v14  ;;  %v2845_v37 = vadd.f32 %v3516_v20, %v2835_v18  ;;  %4417 = vmatpush3.msra.mxu1 %v2966_v12  ;;  %v3529_v14 = vld [vmem:[#allocation5 + $0x1] ss:$0 sm:$0xff] }
0x10a5   :  { %v4509_v32 = vpop.eup %4508  ;;  %4418 = vmatprep.subr.mxu1 %v2965_v6 }
0x10a6   :  { %v2844_v33 = vadd.f32 %v3516_v20, %v2834_v27  ;;  %v2827_v36 = vmul.f32 %v4509_v32, %v5653_v26  ;;  %4419 = vmatpush3.msra.mxu1 %v2965_v6  ;;  %v2963_v26 = vld [vmem:[#allocation19 + $0x80] sm:$0xff] }
0x10a7   :  { %v4511_v42 = vpop.eup %4510  ;;  %4420 = vmatprep.subr.mxu1 %v2964_v10 }
0x10a8   :  { %4386 = vmatprep.mubr.f32.mxu0 %v2844_v33  ;;  %v2826_v15 = vmul.f32 %v4511_v42, %v5656_v30  ;;  %v2837_v17 = vmul.f32 %v3515_v54, %v2827_v36  ;;  %4421 = vmatpush3.msra.mxu1 %v2964_v10  ;;  %v3518_v30 = vld [vmem:[%s5723_s14 + $0x1] ss:$0 sm:$0xff]  ;;  %v4531_v33 = vld [vmem:[#allocation8] ss:$0 sm:$0xff] }
0x10a9   :  { %4387 = vmatmul.mubr.f32.vlgmr.msra.gmra.mxu0 %v2845_v37  ;;  %4422 = vmatprep.subr.mxu1 %v2963_v26 }
0x10aa   :  { %v2836_v1 = vmul.f32 %v3515_v54, %v2826_v15  ;;  %v2847_v3 = vadd.f32 %v3516_v20, %v2837_v17  ;;  %4423 = vmatpush3.msra.mxu1 %v2963_v26  ;;  %v269_v15 = vmul.f32 %v5096_v62, %v5090_v59  ;;  %v298_v26 = vmul.f32 %v5100_v7, %v5093_v61 }
0x10ab   :  { %4437 = vmatprep.subr.mxu1 %v4801_v52 }
0x10ac   :  { %v2846_v39 = vadd.f32 %v3516_v20, %v2836_v1  ;;  %v3524_v20 = vld [vmem:[#allocation10] ss:$0 sm:$0xff] }
0x10ae   :  { %4389 = vmatprep.mubr.f32.mxu0 %v2846_v39 }
0x10af   :  { %4390 = vmatmul.mubr.f32.gmra.mxu0 %v2847_v3 }
0x10b0   :  { %4434 = vmatprep.mubr.msk.f32.mxu0 %vm4802_vm3, %v4801_v52 }
0x1169   :  { %v4388_v13 = vpop.f32.mrf.mxu0 }
0x116a   :  { %v2945_v16 = vadd.f32 %v4388_v13, %v3518_v30 }
0x116b   :  { %v2939_v19 = vpop.f32.mrf.mxu0 }
0x116c   :  { %v2940_v22 = vadd.f32 %v3518_v30, %v2939_v19  ;;  %v2959_v28 = vmax.f32 %v2945_v16, 0.0 }
0x116e   :  { %v2958_v25 = vmax.f32 %v2940_v22, 0.0 }
0x116f   :  { %v4391_v31 = vpop.f32.mrf.mxu0 }
0x1170   :  { %4424 = vmatprep.mubr.f32.mxu1 %v2958_v25  ;;  %v2955_v35 = vadd.f32 %v4391_v31, %v3518_v30 }
0x1171   :  { %4425 = vmatmul.mubr.f32.vlgmr.msra.gmra.mxu1 %v2959_v28  ;;  %v2949_v40 = vpop.f32.mrf.mxu0 }
0x1172   :  { %v2950_v44 = vadd.f32 %v3518_v30, %v2949_v40  ;;  %v2961_v56 = vmax.f32 %v2955_v35, 0.0 }
0x1174   :  { %v2960_v50 = vmax.f32 %v2950_v44, 0.0 }
0x1176   :  { %4427 = vmatprep.mubr.f32.mxu1 %v2960_v50 }
0x1177   :  { %4428 = vmatmul.mubr.f32.gmra.mxu1 %v2961_v56 }
0x1178   :  { %4441 = vmatprep.mubr.msk.f32.mxu1 %vm4802_vm3, %v4801_v52 }
0x1231   :  { %v4426_v53 = vpop.f32.mrf.mxu1 }
0x1232   :  { %v3065_v57 = vadd.f32 %v4426_v53, %v5593_v46 }
0x1233   :  { %v3045_v58 = vpop.f32.mrf.mxu1 }
0x1234   :  { %v3077_v4 = vadd.f32 %v3520_v55, %v3065_v57  ;;  %v3064_v5 = vadd.f32 %v3045_v58, %v5590_v23 }
0x1236   :  { %v3076_v8 = vadd.f32 %v3520_v55, %v3064_v5  ;;  %4431 = vmatpush3.msra.mxu0 %v3077_v4  ;;  %4438 = vmatpush3.msra.mxu1 %v3077_v4 }
0x1237   :  { %4432 = vmatprep.subr.mxu0 %v4801_v52  ;;  %4439 = vmatprep.subr.mxu1 %v4801_v52  ;;  %v4429_v38 = vpop.f32.mrf.mxu1 }
0x1238   :  { %4433 = vmatpush3.msra.mxu0 %v3076_v8  ;;  %4440 = vmatpush3.msra.mxu1 %v3076_v8  ;;  %v3067_v46 = vadd.f32 %v4429_v38, %v5603_v60 }
0x1239   :  { %4444 = vmatprep.subr.mxu0 %v4801_v52  ;;  %4451 = vmatprep.subr.mxu1 %v4801_v52  ;;  %v3055_v23 = vpop.f32.mrf.mxu1 }
0x123a   :  { %4435 = vmatmul.mubr.msk.f32.vlgmr.msra.gmra.mxu0 %vm709_vm2, %v3080_v9  ;;  %4442 = vmatmul.mubr.msk.f32.vlgmr.msra.gmra.mxu1 %vm709_vm2, %v3522_v43  ;;  %v3079_v11 = vadd.f32 %v3520_v55, %v3067_v46  ;;  %v3066_v45 = vadd.f32 %v3055_v23, %v5600_v49  ;;  %v4530_v49 = vld [vmem:[#allocation5 + $0x1] ss:$0 sm:$0xff] }
0x123b   :  { %4448 = vmatprep.mubr.msk.f32.mxu0 %vm4802_vm3, %v4801_v52  ;;  %4455 = vmatprep.mubr.msk.f32.mxu1 %vm4802_vm3, %v4801_v52 }
0x123c   :  { %v3078_v51 = vadd.f32 %v3520_v55, %v3066_v45  ;;  %4445 = vmatpush3.msra.mxu0 %v3079_v11  ;;  %4452 = vmatpush3.msra.mxu1 %v3079_v11 }
0x123d   :  { %4446 = vmatprep.subr.mxu0 %v4801_v52  ;;  %4453 = vmatprep.subr.mxu1 %v4801_v52 }
0x123e   :  { %4447 = vmatpush3.msra.mxu0 %v3078_v51  ;;  %4454 = vmatpush3.msra.mxu1 %v3078_v51 }
0x123f   :  { %4449 = vmatmul.mubr.msk.f32.vlgmr.msra.gmra.mxu0 %vm709_vm2, %v3080_v9  ;;  %4456 = vmatmul.mubr.msk.f32.vlgmr.msra.gmra.mxu1 %vm709_vm2, %v3522_v43 }
0x12fa   :  { %v3150_v60 = vpop.f32.mrf.mxu0  ;;  %v3226_v0 = vpop.f32.mrf.mxu1 }
0x12fb   :  { %v3154_v48 = vmul.f32 %v4529_v21, %v3150_v60  ;;  %v3230_v63 = vmul.f32 %v4530_v49, %v3226_v0 }
0x12fc   :  { %v4436_v2 = vpop.f32.mrf.mxu0  ;;  %v4443_v41 = vpop.f32.mrf.mxu1 }
0x12fd   :  { %v3231_v54 = vadd.f32 %v3230_v63, %v3154_v48 }
0x12ff   :  { %v3233_v18 = vadd.f32 %v3232_v47, %v3231_v54  ;;  %v3316_v27 = vpop.f32.mrf.mxu0  ;;  %v3398_v32 = vpop.f32.mrf.mxu1 }
0x1300   :  { %v3326_v36 = vmul.f32 %v3526_v24, %v3316_v27  ;;  %v3408_v42 = vmul.f32 %v3529_v14, %v3398_v32 }
0x1301   :  { %v3234_v37 = vsub.f32 %v3233_v18, %v4531_v33  ;;  %v4450_v17 = vpop.f32.mrf.mxu0  ;;  %v4457_v1 = vpop.f32.mrf.mxu1 }
0x1302   :  { %v3409_v3 = vadd.f32 %v3408_v42, %v3326_v36 }
0x1303   :  { %v3241_v39 = vmul.f32 %v3524_v20, %v3234_v37 }
0x1304   :  { %v3411_v12 = vadd.f32 %v3409_v3, %v3232_v47 }
0x1305   :  { %v3242_v6 = vmul.f32 %v3241_v39, %v269_v15 }
0x1306   :  { %v3412_v10 = vsub.f32 %v3411_v12, %v4531_v33 }
0x1307   :  { %v3243_v30 = vadd.f32 %v3242_v6, %v5050_v29 }
0x1308   :  { %v3413_v13 = vmul.f32 %v3524_v20, %v3412_v10 }
0x1309   :  { %3244 = vst [vmem:[#allocation20] sm:$0xff] %v3243_v30 }
0x130a   :  { %v3414_v16 = vmul.f32 %v3413_v13, %v298_v26 }
0x130c   :  { %v3415_v19 = vadd.f32 %v3414_v16, %v5061_v34 }
0x130e   :  { %3416 = vst [vmem:[#allocation20 + $0x8] sm:$0xff] %v3415_v19 }
0x130f   :  { %4763 = shalt.err (!%p4760_p3)
}
0x1310   :  { %3428 = dma.vmem_to_hbm [thread:$0]  %s3423_s12, 256, %s5728_s19, [#allocation4], %s4793_s26, %s4793_s26, %s4794_s28  }
0x1311   :  { %4784 = dma.done.wait [#allocation4], 256  }
0x1312   :  { %4785 = vsyncadd [#allocation4], 4294967040 }
0x1313   :  { %3432 = vsyncpa [#allocation3], 1 }
0x1314   :  { %3433 = vsyncpa [#allocation6], 1 }
0x1315   :  { %3434 = vsyncpa [#allocation9], 1 }
0x1316   :  { %3435 = vsyncpa [#allocation12], 1 }
0x1317   :  { %3436 = vsyncpa [#allocation15], 1 }
0x1318   :  { %3437 = vsyncpa [#allocation18], 1 }
0x1319   :  { %3438 = vsyncpa [#allocation4], 1 }

</bundles_post_ra>
